<compile_context>
chip_gen: v5e
topology: v5e:2x2
jax: 0.10.0
libtpu: 0.0.40
codegen_flags: <defaults>
</compile_context>

<pallas_src>
import numpy as np
import jax
import jax.numpy as jnp
from jax.experimental import pallas as pl
from jax.experimental.pallas import tpu as pltpu

BATCH_SIZE = 4      # small synthetic batch (original script used 20)
NUM_POINTS = 8      # points per cloud
LATENT_DIM = 5      # Encoder.nn2 always emits 5 features -> latent_dim == 5
HIDDEN = 100        # true feature width (LayerNorm normalizes over this)
HP = 128            # lane-padded feature width used inside the kernel
EPS = 1e-5          # nn.LayerNorm default eps


# ----------------------------- fused kernel ---------------------------------

def _masked_layernorm(h, gamma, beta):
    """LayerNorm over the first HIDDEN lanes of a (rows, HP) block.

    Requires lanes >= HIDDEN of `h` to be zero (guaranteed by zero-padded
    weight columns / biases), so the full-lane sum equals the real-feature sum.
    """
    lane = jax.lax.broadcasted_iota(jnp.int32, h.shape, 1)
    mask = lane < HIDDEN
    mu = jnp.sum(h, axis=-1, keepdims=True) * (1.0 / HIDDEN)
    diff = jnp.where(mask, h - mu, 0.0)
    var = jnp.sum(diff * diff, axis=-1, keepdims=True) * (1.0 / HIDDEN)
    return diff * jax.lax.rsqrt(var + EPS) * gamma + beta


def autoencoder_kernel(*refs):
    (x_ref, pos_ref,
     e1w1x, e1w1p, e1b1, e1g1, e1be1, e1w2, e1b2, e1g2, e1be2, e1w3, e1b3,
     e2w1, e2b1, e2g1, e2be1, e2w2, e2b2, e2g2, e2be2, e2w3, e2b3,
     dw1l, dw1p, db1, dg1, dbe1, dw2, db2, dg2, dbe2, dw3, db3,
     recon_ref, latent_ref) = refs

    M = x_ref.shape[0]
    B = latent_ref.shape[0]
    N = M // B

    def dot(a, b):
        return jnp.dot(a, b, preferred_element_type=jnp.float32)

    x = x_ref[...]
    pos = pos_ref[...]

    # ---- Encoder.nn1 on all B*N rows; cat(x, pos) realised as split matmul --
    h = dot(x, e1w1x[...]) + dot(pos, e1w1p[...]) + e1b1[...]
    h = jnp.maximum(_masked_layernorm(h, e1g1[...], e1be1[...]), 0.0)
    h = dot(h, e1w2[...]) + e1b2[...]
    h = jnp.maximum(_masked_layernorm(h, e1g2[...], e1be2[...]), 0.0)
    feats = dot(h, e1w3[...]) + e1b3[...]                     # (M, HP)

    # ---- mean over points as an MXU matmul: pooled = P @ feats -------------
    # P[b, r] = 1/N  iff  row r belongs to batch b (r in [b*N, (b+1)*N))
    b_ids = jax.lax.broadcasted_iota(jnp.int32, (B, M), 0)
    r_ids = jax.lax.broadcasted_iota(jnp.int32, (B, M), 1)
    in_grp = jnp.logical_and(r_ids >= b_ids * N, r_ids < (b_ids + 1) * N)
    pool = jnp.where(in_grp, 1.0 / N, 0.0)                    # (B, M)
    pooled = dot(pool, feats)                                 # (B, HP)

    # ---- Encoder.nn2 --------------------------------------------------------
    h = dot(pooled, e2w1[...]) + e2b1[...]
    h = jnp.maximum(_masked_layernorm(h, e2g1[...], e2be1[...]), 0.0)
    h = dot(h, e2w2[...]) + e2b2[...]
    h = jnp.maximum(_masked_layernorm(h, e2g2[...], e2be2[...]), 0.0)
    latent = dot(h, e2w3[...]) + e2b3[...]                    # (B, LATENT_DIM)
    latent_ref[...] = latent.astype(latent_ref.dtype)

    # ---- Decoder: cat(latent_per_point, pos) as split matmul ----------------
    lat_proj = dot(latent, dw1l[...])                         # (B, HP)
    r2 = jax.lax.broadcasted_iota(jnp.int32, (M, B), 0)
    b2 = jax.lax.broadcasted_iota(jnp.int32, (M, B), 1)
    in_grp2 = jnp.logical_and(r2 >= b2 * N, r2 < (b2 + 1) * N)
    expand = jnp.where(in_grp2, 1.0, 0.0)                     # (M, B) one-hot
    h = dot(expand, lat_proj) + dot(pos, dw1p[...]) + db1[...]
    h = jnp.maximum(_masked_layernorm(h, dg1[...], dbe1[...]), 0.0)
    h = dot(h, dw2[...]) + db2[...]
    h = jnp.maximum(_masked_layernorm(h, dg2[...], dbe2[...]), 0.0)
    recon = dot(h, dw3[...]) + db3[...]                       # (M, 3)
    recon_ref[...] = recon.astype(recon_ref.dtype)


def _full_spec(shape):
    nd = len(shape)
    return pl.BlockSpec(shape, lambda i, _nd=nd: (0,) * _nd)


@jax.jit
def autoencoder_forward(kparams, x, pos):
    """kparams: flat tuple from prepare_kernel_params(); x,pos: (B, N, 3)."""
    B, N, _ = x.shape
    M = B * N
    x_flat = x.reshape(M, 3)
    pos_flat = pos.reshape(M, 3)
    inputs = (x_flat, pos_flat) + tuple(kparams)

    recon_flat, latent = pl.pallas_call(
        autoencoder_kernel,
        out_shape=(jax.ShapeDtypeStruct((M, 3), jnp.float32),
                   jax.ShapeDtypeStruct((B, LATENT_DIM), jnp.float32)),
        grid=(1,),
        in_specs=[_full_spec(a.shape) for a in inputs],
        out_specs=(_full_spec((M, 3)), _full_spec((B, LATENT_DIM))),
        compiler_params=pltpu.CompilerParams(
            dimension_semantics=("arbitrary",)),
    )(*inputs)
    return recon_flat.reshape(B, N, 3), latent


# ---------------- parameter init (deterministic, PyTorch-default style) -----

def _init_linear(key, din, dout):
    kw, kb = jax.random.split(key)
    bound = 1.0 / np.sqrt(din)
    w = jax.random.uniform(kw, (din, dout), jnp.float32, -bound, bound)
    b = jax.random.uniform(kb, (1, dout), jnp.float32, -bound, bound)
    return w, b


def _init_mlp3(key, din, h, dout):
    ks = jax.random.split(key, 3)
    w1, b1 = _init_linear(ks[0], din, h)
    w2, b2 = _init_linear(ks[1], h, h)
    w3, b3 = _init_linear(ks[2], h, dout)
    ones = jnp.ones((1, h), jnp.float32)
    zeros = jnp.zeros((1, h), jnp.float32)
    return dict(w1=w1, b1=b1, g1=ones, be1=zeros,
                w2=w2, b2=b2, g2=ones, be2=zeros,
                w3=w3, b3=b3)


def init_autoencoder(key, latent_dim=LATENT_DIM, hidden=HIDDEN):
    k1, k2, k3 = jax.random.split(key, 3)
    return dict(
        enc_nn1=_init_mlp3(k1, 6, hidden, hidden),
        enc_nn2=_init_mlp3(k2, hidden, hidden, 5),
        dec=_init_mlp3(k3, 3 + latent_dim, hidden, 3),
    )


# -------- pad real params to the lane-dense layout the kernel expects -------

def _pad_cols(a, tgt=HP):
    return jnp.pad(a, ((0, 0), (0, tgt - a.shape[1])))


def _pad_rows(a, tgt=HP):
    return jnp.pad(a, ((0, tgt - a.shape[0]), (0, 0)))


def prepare_kernel_params(p):
    e1, e2, d = p["enc_nn1"], p["enc_nn2"], p["dec"]
    pv = _pad_cols  # (1, HIDDEN) -> (1, HP)
    out = []
    # Encoder.nn1: w1 (6,100) split into x-rows [0:3] and pos-rows [3:6]
    out += [_pad_cols(e1["w1"][:3]), _pad_cols(e1["w1"][3:]),
            pv(e1["b1"]), pv(e1["g1"]), pv(e1["be1"]),
            _pad_rows(_pad_cols(e1["w2"])), pv(e1["b2"]), pv(e1["g2"]), pv(e1["be2"]),
            _pad_rows(_pad_cols(e1["w3"])), pv(e1["b3"])]
    # Encoder.nn2
    out += [_pad_rows(_pad_cols(e2["w1"])), pv(e2["b1"]), pv(e2["g1"]), pv(e2["be1"]),
            _pad_rows(_pad_cols(e2["w2"])), pv(e2["b2"]), pv(e2["g2"]), pv(e2["be2"]),
            _pad_rows(e2["w3"]), e2["b3"]]           # (HP,5), (1,5)
    # Decoder: w1 (3+L,100) split into latent-rows [0:L] and pos-rows [L:]
    out += [_pad_cols(d["w1"][:LATENT_DIM]), _pad_cols(d["w1"][LATENT_DIM:]),
            pv(d["b1"]), pv(d["g1"]), pv(d["be1"]),
            _pad_rows(_pad_cols(d["w2"])), pv(d["b2"]), pv(d["g2"]), pv(d["be2"]),
            _pad_rows(d["w3"]), d["b3"]]             # (HP,3), (1,3)
    return tuple(out)


# ---------------- pure-JAX reference (for correctness check) ----------------

def _layernorm(h, gamma, beta):
    mu = jnp.mean(h, axis=-1, keepdims=True)
    var = jnp.mean((h - mu) ** 2, axis=-1, keepdims=True)
    return (h - mu) * jax.lax.rsqrt(var + EPS) * gamma + beta


def _ref_mlp3(x, p):
    h = x @ p["w1"] + p["b1"]
    h = jnp.maximum(_layernorm(h, p["g1"], p["be1"]), 0.0)
    h = h @ p["w2"] + p["b2"]
    h = jnp.maximum(_layernorm(h, p["g2"], p["be2"]), 0.0)
    return h @ p["w3"] + p["b3"]


def _ref_forward(params, x, pos):
    B, N, _ = x.shape
    enc_in = jnp.concatenate([x, pos], axis=2).reshape(-1, 6)
    feats = _ref_mlp3(enc_in, params["enc_nn1"]).reshape(B, N, HIDDEN)
    latent = _ref_mlp3(jnp.mean(feats, axis=1), params["enc_nn2"])
    lat_rep = jnp.broadcast_to(latent[:, None, :], (B, N, LATENT_DIM))
    dec_in = jnp.concatenate([lat_rep, pos], axis=2).reshape(-1, 3 + LATENT_DIM)
    return _ref_mlp3(dec_in, params["dec"]).reshape(B, N, 3), latent


if __name__ == "__main__":
    key = jax.random.PRNGKey(0)
    kp, kx, kpos = jax.random.split(key, 3)

    params = init_autoencoder(kp)
    kparams = prepare_kernel_params(params)
    x = jax.random.normal(kx, (BATCH_SIZE, NUM_POINTS, 3), jnp.float32)
    pos = jax.random.normal(kpos, (BATCH_SIZE, NUM_POINTS, 3), jnp.float32)

    recon, latent = jax.block_until_ready(autoencoder_forward(kparams, x, pos))
    assert recon.shape == (BATCH_SIZE, NUM_POINTS, 3)
    assert latent.shape == (BATCH_SIZE, LATENT_DIM)

    ref_recon, ref_latent = _ref_forward(params, x, pos)
    np.testing.assert_allclose(np.asarray(recon), np.asarray(ref_recon),
                               rtol=1e-4, atol=5e-4)
    np.testing.assert_allclose(np.asarray(latent), np.asarray(ref_latent),
                               rtol=1e-4, atol=5e-4)

    print("KERNEL_OK")
</pallas_src>

<mosaic_0001>
module attributes {stable_mosaic.version = 11 : i64} {
  func.func @autoencoder_kernel(%arg0: i32, %arg1: memref<32x3xf32, #tpu.memory_space<vmem>>, %arg2: memref<32x3xf32, #tpu.memory_space<vmem>>, %arg3: memref<3x128xf32, #tpu.memory_space<vmem>>, %arg4: memref<3x128xf32, #tpu.memory_space<vmem>>, %arg5: memref<1x128xf32, #tpu.memory_space<vmem>>, %arg6: memref<1x128xf32, #tpu.memory_space<vmem>>, %arg7: memref<1x128xf32, #tpu.memory_space<vmem>>, %arg8: memref<128x128xf32, #tpu.memory_space<vmem>>, %arg9: memref<1x128xf32, #tpu.memory_space<vmem>>, %arg10: memref<1x128xf32, #tpu.memory_space<vmem>>, %arg11: memref<1x128xf32, #tpu.memory_space<vmem>>, %arg12: memref<128x128xf32, #tpu.memory_space<vmem>>, %arg13: memref<1x128xf32, #tpu.memory_space<vmem>>, %arg14: memref<128x128xf32, #tpu.memory_space<vmem>>, %arg15: memref<1x128xf32, #tpu.memory_space<vmem>>, %arg16: memref<1x128xf32, #tpu.memory_space<vmem>>, %arg17: memref<1x128xf32, #tpu.memory_space<vmem>>, %arg18: memref<128x128xf32, #tpu.memory_space<vmem>>, %arg19: memref<1x128xf32, #tpu.memory_space<vmem>>, %arg20: memref<1x128xf32, #tpu.memory_space<vmem>>, %arg21: memref<1x128xf32, #tpu.memory_space<vmem>>, %arg22: memref<128x5xf32, #tpu.memory_space<vmem>>, %arg23: memref<1x5xf32, #tpu.memory_space<vmem>>, %arg24: memref<5x128xf32, #tpu.memory_space<vmem>>, %arg25: memref<3x128xf32, #tpu.memory_space<vmem>>, %arg26: memref<1x128xf32, #tpu.memory_space<vmem>>, %arg27: memref<1x128xf32, #tpu.memory_space<vmem>>, %arg28: memref<1x128xf32, #tpu.memory_space<vmem>>, %arg29: memref<128x128xf32, #tpu.memory_space<vmem>>, %arg30: memref<1x128xf32, #tpu.memory_space<vmem>>, %arg31: memref<1x128xf32, #tpu.memory_space<vmem>>, %arg32: memref<1x128xf32, #tpu.memory_space<vmem>>, %arg33: memref<128x3xf32, #tpu.memory_space<vmem>>, %arg34: memref<1x3xf32, #tpu.memory_space<vmem>>, %arg35: memref<32x3xf32, #tpu.memory_space<vmem>>, %arg36: memref<4x5xf32, #tpu.memory_space<vmem>>) attributes {dimension_semantics = [#tpu.dimension_semantics<arbitrary>], iteration_bounds = array<i64: 1>, scalar_prefetch = 0 : i64, scratch_operands = 0 : i64, tpu.core_type = #tpu.core_type<tc>, window_params = [{pipeline_mode = #tpu.pipeline_mode<synchronous>, transform_indices = @transform_0, window_bounds = array<i64: 32, 3>}, {pipeline_mode = #tpu.pipeline_mode<synchronous>, transform_indices = @transform_1, window_bounds = array<i64: 32, 3>}, {pipeline_mode = #tpu.pipeline_mode<synchronous>, transform_indices = @transform_2, window_bounds = array<i64: 3, 128>}, {pipeline_mode = #tpu.pipeline_mode<synchronous>, transform_indices = @transform_3, window_bounds = array<i64: 3, 128>}, {pipeline_mode = #tpu.pipeline_mode<synchronous>, transform_indices = @transform_4, window_bounds = array<i64: 1, 128>}, {pipeline_mode = #tpu.pipeline_mode<synchronous>, transform_indices = @transform_5, window_bounds = array<i64: 1, 128>}, {pipeline_mode = #tpu.pipeline_mode<synchronous>, transform_indices = @transform_6, window_bounds = array<i64: 1, 128>}, {pipeline_mode = #tpu.pipeline_mode<synchronous>, transform_indices = @transform_7, window_bounds = array<i64: 128, 128>}, {pipeline_mode = #tpu.pipeline_mode<synchronous>, transform_indices = @transform_8, window_bounds = array<i64: 1, 128>}, {pipeline_mode = #tpu.pipeline_mode<synchronous>, transform_indices = @transform_9, window_bounds = array<i64: 1, 128>}, {pipeline_mode = #tpu.pipeline_mode<synchronous>, transform_indices = @transform_10, window_bounds = array<i64: 1, 128>}, {pipeline_mode = #tpu.pipeline_mode<synchronous>, transform_indices = @transform_11, window_bounds = array<i64: 128, 128>}, {pipeline_mode = #tpu.pipeline_mode<synchronous>, transform_indices = @transform_12, window_bounds = array<i64: 1, 128>}, {pipeline_mode = #tpu.pipeline_mode<synchronous>, transform_indices = @transform_13, window_bounds = array<i64: 128, 128>}, {pipeline_mode = #tpu.pipeline_mode<synchronous>, transform_indices = @transform_14, window_bounds = array<i64: 1, 128>}, {pipeline_mode = #tpu.pipeline_mode<synchronous>, transform_indices = @transform_15, window_bounds = array<i64: 1, 128>}, {pipeline_mode = #tpu.pipeline_mode<synchronous>, transform_indices = @transform_16, window_bounds = array<i64: 1, 128>}, {pipeline_mode = #tpu.pipeline_mode<synchronous>, transform_indices = @transform_17, window_bounds = array<i64: 128, 128>}, {pipeline_mode = #tpu.pipeline_mode<synchronous>, transform_indices = @transform_18, window_bounds = array<i64: 1, 128>}, {pipeline_mode = #tpu.pipeline_mode<synchronous>, transform_indices = @transform_19, window_bounds = array<i64: 1, 128>}, {pipeline_mode = #tpu.pipeline_mode<synchronous>, transform_indices = @transform_20, window_bounds = array<i64: 1, 128>}, {pipeline_mode = #tpu.pipeline_mode<synchronous>, transform_indices = @transform_21, window_bounds = array<i64: 128, 5>}, {pipeline_mode = #tpu.pipeline_mode<synchronous>, transform_indices = @transform_22, window_bounds = array<i64: 1, 5>}, {pipeline_mode = #tpu.pipeline_mode<synchronous>, transform_indices = @transform_23, window_bounds = array<i64: 5, 128>}, {pipeline_mode = #tpu.pipeline_mode<synchronous>, transform_indices = @transform_24, window_bounds = array<i64: 3, 128>}, {pipeline_mode = #tpu.pipeline_mode<synchronous>, transform_indices = @transform_25, window_bounds = array<i64: 1, 128>}, {pipeline_mode = #tpu.pipeline_mode<synchronous>, transform_indices = @transform_26, window_bounds = array<i64: 1, 128>}, {pipeline_mode = #tpu.pipeline_mode<synchronous>, transform_indices = @transform_27, window_bounds = array<i64: 1, 128>}, {pipeline_mode = #tpu.pipeline_mode<synchronous>, transform_indices = @transform_28, window_bounds = array<i64: 128, 128>}, {pipeline_mode = #tpu.pipeline_mode<synchronous>, transform_indices = @transform_29, window_bounds = array<i64: 1, 128>}, {pipeline_mode = #tpu.pipeline_mode<synchronous>, transform_indices = @transform_30, window_bounds = array<i64: 1, 128>}, {pipeline_mode = #tpu.pipeline_mode<synchronous>, transform_indices = @transform_31, window_bounds = array<i64: 1, 128>}, {pipeline_mode = #tpu.pipeline_mode<synchronous>, transform_indices = @transform_32, window_bounds = array<i64: 128, 3>}, {pipeline_mode = #tpu.pipeline_mode<synchronous>, transform_indices = @transform_33, window_bounds = array<i64: 1, 3>}, {pipeline_mode = #tpu.pipeline_mode<synchronous>, transform_indices = @transform_34, window_bounds = array<i64: 32, 3>}, {pipeline_mode = #tpu.pipeline_mode<synchronous>, transform_indices = @transform_35, window_bounds = array<i64: 4, 5>}]} {
    %c0 = arith.constant 0 : index
    %c0_0 = arith.constant 0 : index
    %0 = vector.load %arg1[%c0, %c0_0] : memref<32x3xf32, #tpu.memory_space<vmem>>, vector<32x3xf32>
    %c0_1 = arith.constant 0 : index
    %c0_2 = arith.constant 0 : index
    %1 = vector.load %arg2[%c0_1, %c0_2] : memref<32x3xf32, #tpu.memory_space<vmem>>, vector<32x3xf32>
    %c0_3 = arith.constant 0 : index
    %c0_4 = arith.constant 0 : index
    %2 = vector.load %arg3[%c0_3, %c0_4] : memref<3x128xf32, #tpu.memory_space<vmem>>, vector<3x128xf32>
    %cst = arith.constant dense<0.000000e+00> : vector<32x128xf32>
    %3 = tpu.matmul %0, %2, %cst {dimension_numbers = #tpu.dot_dimension_numbers<[1], [0], [0], [1], [0, 0, 1, 1], [], []>} : vector<32x3xf32>, vector<3x128xf32>, vector<32x128xf32> -> vector<32x128xf32>
    %c0_5 = arith.constant 0 : index
    %c0_6 = arith.constant 0 : index
    %4 = vector.load %arg4[%c0_5, %c0_6] : memref<3x128xf32, #tpu.memory_space<vmem>>, vector<3x128xf32>
    %cst_7 = arith.constant dense<0.000000e+00> : vector<32x128xf32>
    %5 = tpu.matmul %1, %4, %cst_7 {dimension_numbers = #tpu.dot_dimension_numbers<[1], [0], [0], [1], [0, 0, 1, 1], [], []>} : vector<32x3xf32>, vector<3x128xf32>, vector<32x128xf32> -> vector<32x128xf32>
    %6 = arith.addf %3, %5 : vector<32x128xf32>
    %c0_8 = arith.constant 0 : index
    %c0_9 = arith.constant 0 : index
    %7 = vector.load %arg5[%c0_8, %c0_9] : memref<1x128xf32, #tpu.memory_space<vmem>>, vector<1x128xf32>
    %8 = vector.broadcast %7 : vector<1x128xf32> to vector<32x128xf32>
    %9 = arith.addf %6, %8 : vector<32x128xf32>
    %c0_10 = arith.constant 0 : index
    %c0_11 = arith.constant 0 : index
    %10 = vector.load %arg6[%c0_10, %c0_11] : memref<1x128xf32, #tpu.memory_space<vmem>>, vector<1x128xf32>
    %c0_12 = arith.constant 0 : index
    %c0_13 = arith.constant 0 : index
    %11 = vector.load %arg7[%c0_12, %c0_13] : memref<1x128xf32, #tpu.memory_space<vmem>>, vector<1x128xf32>
    %12 = tpu.iota {dimensions = array<i32: 1>} : vector<32x128xi32>
    %c100_i32 = arith.constant 100 : i32
    %13 = vector.broadcast %c100_i32 : i32 to vector<32x128xi32>
    %14 = arith.cmpi slt, %12, %13 : vector<32x128xi32>
    %cst_14 = arith.constant dense<0.000000e+00> : vector<32xf32>
    %15 = vector.multi_reduction <add>, %9, %cst_14 [1] : vector<32x128xf32> to vector<32xf32>
    %16 = vector.shape_cast %15 : vector<32xf32> to vector<32x1xf32>
    %cst_15 = arith.constant 0.00999999977 : f32
    %17 = vector.broadcast %cst_15 : f32 to vector<32x1xf32>
    %18 = arith.mulf %16, %17 : vector<32x1xf32>
    %19 = vector.broadcast %18 : vector<32x1xf32> to vector<32x128xf32>
    %20 = arith.subf %9, %19 : vector<32x128xf32>
    %cst_16 = arith.constant 0.000000e+00 : f32
    %21 = vector.broadcast %cst_16 : f32 to vector<32x128xf32>
    %22 = arith.select %14, %20, %21 : vector<32x128xi1>, vector<32x128xf32>
    %23 = arith.mulf %22, %22 : vector<32x128xf32>
    %cst_17 = arith.constant dense<0.000000e+00> : vector<32xf32>
    %24 = vector.multi_reduction <add>, %23, %cst_17 [1] : vector<32x128xf32> to vector<32xf32>
    %25 = vector.shape_cast %24 : vector<32xf32> to vector<32x1xf32>
    %cst_18 = arith.constant 0.00999999977 : f32
    %26 = vector.broadcast %cst_18 : f32 to vector<32x1xf32>
    %27 = arith.mulf %25, %26 : vector<32x1xf32>
    %cst_19 = arith.constant 9.99999974E-6 : f32
    %28 = vector.broadcast %cst_19 : f32 to vector<32x1xf32>
    %29 = arith.addf %27, %28 : vector<32x1xf32>
    %30 = math.rsqrt %29 : vector<32x1xf32>
    %31 = vector.broadcast %30 : vector<32x1xf32> to vector<32x128xf32>
    %32 = arith.mulf %22, %31 : vector<32x128xf32>
    %33 = vector.broadcast %10 : vector<1x128xf32> to vector<32x128xf32>
    %34 = arith.mulf %32, %33 : vector<32x128xf32>
    %35 = vector.broadcast %11 : vector<1x128xf32> to vector<32x128xf32>
    %36 = arith.addf %34, %35 : vector<32x128xf32>
    %cst_20 = arith.constant 0.000000e+00 : f32
    %37 = vector.broadcast %cst_20 : f32 to vector<32x128xf32>
    %38 = arith.maximumf %36, %37 : vector<32x128xf32>
    %c0_21 = arith.constant 0 : index
    %c0_22 = arith.constant 0 : index
    %39 = vector.load %arg8[%c0_21, %c0_22] : memref<128x128xf32, #tpu.memory_space<vmem>>, vector<128x128xf32>
    %cst_23 = arith.constant dense<0.000000e+00> : vector<32x128xf32>
    %40 = tpu.matmul %38, %39, %cst_23 {dimension_numbers = #tpu.dot_dimension_numbers<[1], [0], [0], [1], [0, 0, 1, 1], [], []>} : vector<32x128xf32>, vector<128x128xf32>, vector<32x128xf32> -> vector<32x128xf32>
    %c0_24 = arith.constant 0 : index
    %c0_25 = arith.constant 0 : index
    %41 = vector.load %arg9[%c0_24, %c0_25] : memref<1x128xf32, #tpu.memory_space<vmem>>, vector<1x128xf32>
    %42 = vector.broadcast %41 : vector<1x128xf32> to vector<32x128xf32>
    %43 = arith.addf %40, %42 : vector<32x128xf32>
    %c0_26 = arith.constant 0 : index
    %c0_27 = arith.constant 0 : index
    %44 = vector.load %arg10[%c0_26, %c0_27] : memref<1x128xf32, #tpu.memory_space<vmem>>, vector<1x128xf32>
    %c0_28 = arith.constant 0 : index
    %c0_29 = arith.constant 0 : index
    %45 = vector.load %arg11[%c0_28, %c0_29] : memref<1x128xf32, #tpu.memory_space<vmem>>, vector<1x128xf32>
    %46 = tpu.iota {dimensions = array<i32: 1>} : vector<32x128xi32>
    %c100_i32_30 = arith.constant 100 : i32
    %47 = vector.broadcast %c100_i32_30 : i32 to vector<32x128xi32>
    %48 = arith.cmpi slt, %46, %47 : vector<32x128xi32>
    %cst_31 = arith.constant dense<0.000000e+00> : vector<32xf32>
    %49 = vector.multi_reduction <add>, %43, %cst_31 [1] : vector<32x128xf32> to vector<32xf32>
    %50 = vector.shape_cast %49 : vector<32xf32> to vector<32x1xf32>
    %cst_32 = arith.constant 0.00999999977 : f32
    %51 = vector.broadcast %cst_32 : f32 to vector<32x1xf32>
    %52 = arith.mulf %50, %51 : vector<32x1xf32>
    %53 = vector.broadcast %52 : vector<32x1xf32> to vector<32x128xf32>
    %54 = arith.subf %43, %53 : vector<32x128xf32>
    %cst_33 = arith.constant 0.000000e+00 : f32
    %55 = vector.broadcast %cst_33 : f32 to vector<32x128xf32>
    %56 = arith.select %48, %54, %55 : vector<32x128xi1>, vector<32x128xf32>
    %57 = arith.mulf %56, %56 : vector<32x128xf32>
    %cst_34 = arith.constant dense<0.000000e+00> : vector<32xf32>
    %58 = vector.multi_reduction <add>, %57, %cst_34 [1] : vector<32x128xf32> to vector<32xf32>
    %59 = vector.shape_cast %58 : vector<32xf32> to vector<32x1xf32>
    %cst_35 = arith.constant 0.00999999977 : f32
    %60 = vector.broadcast %cst_35 : f32 to vector<32x1xf32>
    %61 = arith.mulf %59, %60 : vector<32x1xf32>
    %cst_36 = arith.constant 9.99999974E-6 : f32
    %62 = vector.broadcast %cst_36 : f32 to vector<32x1xf32>
    %63 = arith.addf %61, %62 : vector<32x1xf32>
    %64 = math.rsqrt %63 : vector<32x1xf32>
    %65 = vector.broadcast %64 : vector<32x1xf32> to vector<32x128xf32>
    %66 = arith.mulf %56, %65 : vector<32x128xf32>
    %67 = vector.broadcast %44 : vector<1x128xf32> to vector<32x128xf32>
    %68 = arith.mulf %66, %67 : vector<32x128xf32>
    %69 = vector.broadcast %45 : vector<1x128xf32> to vector<32x128xf32>
    %70 = arith.addf %68, %69 : vector<32x128xf32>
    %cst_37 = arith.constant 0.000000e+00 : f32
    %71 = vector.broadcast %cst_37 : f32 to vector<32x128xf32>
    %72 = arith.maximumf %70, %71 : vector<32x128xf32>
    %c0_38 = arith.constant 0 : index
    %c0_39 = arith.constant 0 : index
    %73 = vector.load %arg12[%c0_38, %c0_39] : memref<128x128xf32, #tpu.memory_space<vmem>>, vector<128x128xf32>
    %cst_40 = arith.constant dense<0.000000e+00> : vector<32x128xf32>
    %74 = tpu.matmul %72, %73, %cst_40 {dimension_numbers = #tpu.dot_dimension_numbers<[1], [0], [0], [1], [0, 0, 1, 1], [], []>} : vector<32x128xf32>, vector<128x128xf32>, vector<32x128xf32> -> vector<32x128xf32>
    %c0_41 = arith.constant 0 : index
    %c0_42 = arith.constant 0 : index
    %75 = vector.load %arg13[%c0_41, %c0_42] : memref<1x128xf32, #tpu.memory_space<vmem>>, vector<1x128xf32>
    %76 = vector.broadcast %75 : vector<1x128xf32> to vector<32x128xf32>
    %77 = arith.addf %74, %76 : vector<32x128xf32>
    %78 = tpu.iota {dimensions = array<i32: 0>} : vector<4x32xi32>
    %79 = tpu.iota {dimensions = array<i32: 1>} : vector<4x32xi32>
    %c8_i32 = arith.constant 8 : i32
    %80 = vector.broadcast %c8_i32 : i32 to vector<4x32xi32>
    %81 = arith.muli %78, %80 : vector<4x32xi32>
    %82 = arith.cmpi sge, %79, %81 : vector<4x32xi32>
    %c1_i32 = arith.constant 1 : i32
    %83 = vector.broadcast %c1_i32 : i32 to vector<4x32xi32>
    %84 = arith.addi %78, %83 : vector<4x32xi32>
    %c8_i32_43 = arith.constant 8 : i32
    %85 = vector.broadcast %c8_i32_43 : i32 to vector<4x32xi32>
    %86 = arith.muli %84, %85 : vector<4x32xi32>
    %87 = arith.cmpi slt, %79, %86 : vector<4x32xi32>
    %88 = arith.andi %82, %87 : vector<4x32xi1>
    %cst_44 = arith.constant 1.250000e-01 : f32
    %cst_45 = arith.constant 0.000000e+00 : f32
    %89 = vector.broadcast %cst_44 : f32 to vector<4x32xf32>
    %90 = vector.broadcast %cst_45 : f32 to vector<4x32xf32>
    %91 = arith.select %88, %89, %90 : vector<4x32xi1>, vector<4x32xf32>
    %cst_46 = arith.constant dense<0.000000e+00> : vector<4x128xf32>
    %92 = tpu.matmul %91, %77, %cst_46 {dimension_numbers = #tpu.dot_dimension_numbers<[1], [0], [0], [1], [0, 0, 1, 1], [], []>} : vector<4x32xf32>, vector<32x128xf32>, vector<4x128xf32> -> vector<4x128xf32>
    %c0_47 = arith.constant 0 : index
    %c0_48 = arith.constant 0 : index
    %93 = vector.load %arg14[%c0_47, %c0_48] : memref<128x128xf32, #tpu.memory_space<vmem>>, vector<128x128xf32>
    %cst_49 = arith.constant dense<0.000000e+00> : vector<4x128xf32>
    %94 = tpu.matmul %92, %93, %cst_49 {dimension_numbers = #tpu.dot_dimension_numbers<[1], [0], [0], [1], [0, 0, 1, 1], [], []>} : vector<4x128xf32>, vector<128x128xf32>, vector<4x128xf32> -> vector<4x128xf32>
    %c0_50 = arith.constant 0 : index
    %c0_51 = arith.constant 0 : index
    %95 = vector.load %arg15[%c0_50, %c0_51] : memref<1x128xf32, #tpu.memory_space<vmem>>, vector<1x128xf32>
    %96 = vector.broadcast %95 : vector<1x128xf32> to vector<4x128xf32>
    %97 = arith.addf %94, %96 : vector<4x128xf32>
    %c0_52 = arith.constant 0 : index
    %c0_53 = arith.constant 0 : index
    %98 = vector.load %arg16[%c0_52, %c0_53] : memref<1x128xf32, #tpu.memory_space<vmem>>, vector<1x128xf32>
    %c0_54 = arith.constant 0 : index
    %c0_55 = arith.constant 0 : index
    %99 = vector.load %arg17[%c0_54, %c0_55] : memref<1x128xf32, #tpu.memory_space<vmem>>, vector<1x128xf32>
    %100 = tpu.iota {dimensions = array<i32: 1>} : vector<4x128xi32>
    %c100_i32_56 = arith.constant 100 : i32
    %101 = vector.broadcast %c100_i32_56 : i32 to vector<4x128xi32>
    %102 = arith.cmpi slt, %100, %101 : vector<4x128xi32>
    %cst_57 = arith.constant dense<0.000000e+00> : vector<4xf32>
    %103 = vector.multi_reduction <add>, %97, %cst_57 [1] : vector<4x128xf32> to vector<4xf32>
    %104 = vector.shape_cast %103 : vector<4xf32> to vector<4x1xf32>
    %cst_58 = arith.constant 0.00999999977 : f32
    %105 = vector.broadcast %cst_58 : f32 to vector<4x1xf32>
    %106 = arith.mulf %104, %105 : vector<4x1xf32>
    %107 = vector.broadcast %106 : vector<4x1xf32> to vector<4x128xf32>
    %108 = arith.subf %97, %107 : vector<4x128xf32>
    %cst_59 = arith.constant 0.000000e+00 : f32
    %109 = vector.broadcast %cst_59 : f32 to vector<4x128xf32>
    %110 = arith.select %102, %108, %109 : vector<4x128xi1>, vector<4x128xf32>
    %111 = arith.mulf %110, %110 : vector<4x128xf32>
    %cst_60 = arith.constant dense<0.000000e+00> : vector<4xf32>
    %112 = vector.multi_reduction <add>, %111, %cst_60 [1] : vector<4x128xf32> to vector<4xf32>
    %113 = vector.shape_cast %112 : vector<4xf32> to vector<4x1xf32>
    %cst_61 = arith.constant 0.00999999977 : f32
    %114 = vector.broadcast %cst_61 : f32 to vector<4x1xf32>
    %115 = arith.mulf %113, %114 : vector<4x1xf32>
    %cst_62 = arith.constant 9.99999974E-6 : f32
    %116 = vector.broadcast %cst_62 : f32 to vector<4x1xf32>
    %117 = arith.addf %115, %116 : vector<4x1xf32>
    %118 = math.rsqrt %117 : vector<4x1xf32>
    %119 = vector.broadcast %118 : vector<4x1xf32> to vector<4x128xf32>
    %120 = arith.mulf %110, %119 : vector<4x128xf32>
    %121 = vector.broadcast %98 : vector<1x128xf32> to vector<4x128xf32>
    %122 = arith.mulf %120, %121 : vector<4x128xf32>
    %123 = vector.broadcast %99 : vector<1x128xf32> to vector<4x128xf32>
    %124 = arith.addf %122, %123 : vector<4x128xf32>
    %cst_63 = arith.constant 0.000000e+00 : f32
    %125 = vector.broadcast %cst_63 : f32 to vector<4x128xf32>
    %126 = arith.maximumf %124, %125 : vector<4x128xf32>
    %c0_64 = arith.constant 0 : index
    %c0_65 = arith.constant 0 : index
    %127 = vector.load %arg18[%c0_64, %c0_65] : memref<128x128xf32, #tpu.memory_space<vmem>>, vector<128x128xf32>
    %cst_66 = arith.constant dense<0.000000e+00> : vector<4x128xf32>
    %128 = tpu.matmul %126, %127, %cst_66 {dimension_numbers = #tpu.dot_dimension_numbers<[1], [0], [0], [1], [0, 0, 1, 1], [], []>} : vector<4x128xf32>, vector<128x128xf32>, vector<4x128xf32> -> vector<4x128xf32>
    %c0_67 = arith.constant 0 : index
    %c0_68 = arith.constant 0 : index
    %129 = vector.load %arg19[%c0_67, %c0_68] : memref<1x128xf32, #tpu.memory_space<vmem>>, vector<1x128xf32>
    %130 = vector.broadcast %129 : vector<1x128xf32> to vector<4x128xf32>
    %131 = arith.addf %128, %130 : vector<4x128xf32>
    %c0_69 = arith.constant 0 : index
    %c0_70 = arith.constant 0 : index
    %132 = vector.load %arg20[%c0_69, %c0_70] : memref<1x128xf32, #tpu.memory_space<vmem>>, vector<1x128xf32>
    %c0_71 = arith.constant 0 : index
    %c0_72 = arith.constant 0 : index
    %133 = vector.load %arg21[%c0_71, %c0_72] : memref<1x128xf32, #tpu.memory_space<vmem>>, vector<1x128xf32>
    %134 = tpu.iota {dimensions = array<i32: 1>} : vector<4x128xi32>
    %c100_i32_73 = arith.constant 100 : i32
    %135 = vector.broadcast %c100_i32_73 : i32 to vector<4x128xi32>
    %136 = arith.cmpi slt, %134, %135 : vector<4x128xi32>
    %cst_74 = arith.constant dense<0.000000e+00> : vector<4xf32>
    %137 = vector.multi_reduction <add>, %131, %cst_74 [1] : vector<4x128xf32> to vector<4xf32>
    %138 = vector.shape_cast %137 : vector<4xf32> to vector<4x1xf32>
    %cst_75 = arith.constant 0.00999999977 : f32
    %139 = vector.broadcast %cst_75 : f32 to vector<4x1xf32>
    %140 = arith.mulf %138, %139 : vector<4x1xf32>
    %141 = vector.broadcast %140 : vector<4x1xf32> to vector<4x128xf32>
    %142 = arith.subf %131, %141 : vector<4x128xf32>
    %cst_76 = arith.constant 0.000000e+00 : f32
    %143 = vector.broadcast %cst_76 : f32 to vector<4x128xf32>
    %144 = arith.select %136, %142, %143 : vector<4x128xi1>, vector<4x128xf32>
    %145 = arith.mulf %144, %144 : vector<4x128xf32>
    %cst_77 = arith.constant dense<0.000000e+00> : vector<4xf32>
    %146 = vector.multi_reduction <add>, %145, %cst_77 [1] : vector<4x128xf32> to vector<4xf32>
    %147 = vector.shape_cast %146 : vector<4xf32> to vector<4x1xf32>
    %cst_78 = arith.constant 0.00999999977 : f32
    %148 = vector.broadcast %cst_78 : f32 to vector<4x1xf32>
    %149 = arith.mulf %147, %148 : vector<4x1xf32>
    %cst_79 = arith.constant 9.99999974E-6 : f32
    %150 = vector.broadcast %cst_79 : f32 to vector<4x1xf32>
    %151 = arith.addf %149, %150 : vector<4x1xf32>
    %152 = math.rsqrt %151 : vector<4x1xf32>
    %153 = vector.broadcast %152 : vector<4x1xf32> to vector<4x128xf32>
    %154 = arith.mulf %144, %153 : vector<4x128xf32>
    %155 = vector.broadcast %132 : vector<1x128xf32> to vector<4x128xf32>
    %156 = arith.mulf %154, %155 : vector<4x128xf32>
    %157 = vector.broadcast %133 : vector<1x128xf32> to vector<4x128xf32>
    %158 = arith.addf %156, %157 : vector<4x128xf32>
    %cst_80 = arith.constant 0.000000e+00 : f32
    %159 = vector.broadcast %cst_80 : f32 to vector<4x128xf32>
    %160 = arith.maximumf %158, %159 : vector<4x128xf32>
    %c0_81 = arith.constant 0 : index
    %c0_82 = arith.constant 0 : index
    %161 = vector.load %arg22[%c0_81, %c0_82] : memref<128x5xf32, #tpu.memory_space<vmem>>, vector<128x5xf32>
    %cst_83 = arith.constant dense<0.000000e+00> : vector<4x5xf32>
    %162 = tpu.matmul %160, %161, %cst_83 {dimension_numbers = #tpu.dot_dimension_numbers<[1], [0], [0], [1], [0, 0, 1, 1], [], []>} : vector<4x128xf32>, vector<128x5xf32>, vector<4x5xf32> -> vector<4x5xf32>
    %c0_84 = arith.constant 0 : index
    %c0_85 = arith.constant 0 : index
    %163 = vector.load %arg23[%c0_84, %c0_85] : memref<1x5xf32, #tpu.memory_space<vmem>>, vector<1x5xf32>
    %164 = vector.broadcast %163 : vector<1x5xf32> to vector<4x5xf32>
    %165 = arith.addf %162, %164 : vector<4x5xf32>
    %c0_86 = arith.constant 0 : index
    %c0_87 = arith.constant 0 : index
    %166 = vector.load %arg36[%c0_86, %c0_87] : memref<4x5xf32, #tpu.memory_space<vmem>>, vector<4x5xf32>
    tpu.vector_store %arg36[%c0_86, %c0_87], %165 {strides = array<i32>} : memref<4x5xf32, #tpu.memory_space<vmem>>, vector<4x5xf32>,
    %c0_88 = arith.constant 0 : index
    %c0_89 = arith.constant 0 : index
    %167 = vector.load %arg24[%c0_88, %c0_89] : memref<5x128xf32, #tpu.memory_space<vmem>>, vector<5x128xf32>
    %cst_90 = arith.constant dense<0.000000e+00> : vector<4x128xf32>
    %168 = tpu.matmul %165, %167, %cst_90 {dimension_numbers = #tpu.dot_dimension_numbers<[1], [0], [0], [1], [0, 0, 1, 1], [], []>} : vector<4x5xf32>, vector<5x128xf32>, vector<4x128xf32> -> vector<4x128xf32>
    %169 = tpu.iota {dimensions = array<i32: 0>} : vector<32x4xi32>
    %170 = tpu.iota {dimensions = array<i32: 1>} : vector<32x4xi32>
    %c8_i32_91 = arith.constant 8 : i32
    %171 = vector.broadcast %c8_i32_91 : i32 to vector<32x4xi32>
    %172 = arith.muli %170, %171 : vector<32x4xi32>
    %173 = arith.cmpi sge, %169, %172 : vector<32x4xi32>
    %c1_i32_92 = arith.constant 1 : i32
    %174 = vector.broadcast %c1_i32_92 : i32 to vector<32x4xi32>
    %175 = arith.addi %170, %174 : vector<32x4xi32>
    %c8_i32_93 = arith.constant 8 : i32
    %176 = vector.broadcast %c8_i32_93 : i32 to vector<32x4xi32>
    %177 = arith.muli %175, %176 : vector<32x4xi32>
    %178 = arith.cmpi slt, %169, %177 : vector<32x4xi32>
    %179 = arith.andi %173, %178 : vector<32x4xi1>
    %cst_94 = arith.constant 1.000000e+00 : f32
    %cst_95 = arith.constant 0.000000e+00 : f32
    %180 = vector.broadcast %cst_94 : f32 to vector<32x4xf32>
    %181 = vector.broadcast %cst_95 : f32 to vector<32x4xf32>
    %182 = arith.select %179, %180, %181 : vector<32x4xi1>, vector<32x4xf32>
    %cst_96 = arith.constant dense<0.000000e+00> : vector<32x128xf32>
    %183 = tpu.matmul %182, %168, %cst_96 {dimension_numbers = #tpu.dot_dimension_numbers<[1], [0], [0], [1], [0, 0, 1, 1], [], []>} : vector<32x4xf32>, vector<4x128xf32>, vector<32x128xf32> -> vector<32x128xf32>
    %c0_97 = arith.constant 0 : index
    %c0_98 = arith.constant 0 : index
    %184 = vector.load %arg25[%c0_97, %c0_98] : memref<3x128xf32, #tpu.memory_space<vmem>>, vector<3x128xf32>
    %cst_99 = arith.constant dense<0.000000e+00> : vector<32x128xf32>
    %185 = tpu.matmul %1, %184, %cst_99 {dimension_numbers = #tpu.dot_dimension_numbers<[1], [0], [0], [1], [0, 0, 1, 1], [], []>} : vector<32x3xf32>, vector<3x128xf32>, vector<32x128xf32> -> vector<32x128xf32>
    %186 = arith.addf %183, %185 : vector<32x128xf32>
    %c0_100 = arith.constant 0 : index
    %c0_101 = arith.constant 0 : index
    %187 = vector.load %arg26[%c0_100, %c0_101] : memref<1x128xf32, #tpu.memory_space<vmem>>, vector<1x128xf32>
    %188 = vector.broadcast %187 : vector<1x128xf32> to vector<32x128xf32>
    %189 = arith.addf %186, %188 : vector<32x128xf32>
    %c0_102 = arith.constant 0 : index
    %c0_103 = arith.constant 0 : index
    %190 = vector.load %arg27[%c0_102, %c0_103] : memref<1x128xf32, #tpu.memory_space<vmem>>, vector<1x128xf32>
    %c0_104 = arith.constant 0 : index
    %c0_105 = arith.constant 0 : index
    %191 = vector.load %arg28[%c0_104, %c0_105] : memref<1x128xf32, #tpu.memory_space<vmem>>, vector<1x128xf32>
    %192 = tpu.iota {dimensions = array<i32: 1>} : vector<32x128xi32>
    %c100_i32_106 = arith.constant 100 : i32
    %193 = vector.broadcast %c100_i32_106 : i32 to vector<32x128xi32>
    %194 = arith.cmpi slt, %192, %193 : vector<32x128xi32>
    %cst_107 = arith.constant dense<0.000000e+00> : vector<32xf32>
    %195 = vector.multi_reduction <add>, %189, %cst_107 [1] : vector<32x128xf32> to vector<32xf32>
    %196 = vector.shape_cast %195 : vector<32xf32> to vector<32x1xf32>
    %cst_108 = arith.constant 0.00999999977 : f32
    %197 = vector.broadcast %cst_108 : f32 to vector<32x1xf32>
    %198 = arith.mulf %196, %197 : vector<32x1xf32>
    %199 = vector.broadcast %198 : vector<32x1xf32> to vector<32x128xf32>
    %200 = arith.subf %189, %199 : vector<32x128xf32>
    %cst_109 = arith.constant 0.000000e+00 : f32
    %201 = vector.broadcast %cst_109 : f32 to vector<32x128xf32>
    %202 = arith.select %194, %200, %201 : vector<32x128xi1>, vector<32x128xf32>
    %203 = arith.mulf %202, %202 : vector<32x128xf32>
    %cst_110 = arith.constant dense<0.000000e+00> : vector<32xf32>
    %204 = vector.multi_reduction <add>, %203, %cst_110 [1] : vector<32x128xf32> to vector<32xf32>
    %205 = vector.shape_cast %204 : vector<32xf32> to vector<32x1xf32>
    %cst_111 = arith.constant 0.00999999977 : f32
    %206 = vector.broadcast %cst_111 : f32 to vector<32x1xf32>
    %207 = arith.mulf %205, %206 : vector<32x1xf32>
    %cst_112 = arith.constant 9.99999974E-6 : f32
    %208 = vector.broadcast %cst_112 : f32 to vector<32x1xf32>
    %209 = arith.addf %207, %208 : vector<32x1xf32>
    %210 = math.rsqrt %209 : vector<32x1xf32>
    %211 = vector.broadcast %210 : vector<32x1xf32> to vector<32x128xf32>
    %212 = arith.mulf %202, %211 : vector<32x128xf32>
    %213 = vector.broadcast %190 : vector<1x128xf32> to vector<32x128xf32>
    %214 = arith.mulf %212, %213 : vector<32x128xf32>
    %215 = vector.broadcast %191 : vector<1x128xf32> to vector<32x128xf32>
    %216 = arith.addf %214, %215 : vector<32x128xf32>
    %cst_113 = arith.constant 0.000000e+00 : f32
    %217 = vector.broadcast %cst_113 : f32 to vector<32x128xf32>
    %218 = arith.maximumf %216, %217 : vector<32x128xf32>
    %c0_114 = arith.constant 0 : index
    %c0_115 = arith.constant 0 : index
    %219 = vector.load %arg29[%c0_114, %c0_115] : memref<128x128xf32, #tpu.memory_space<vmem>>, vector<128x128xf32>
    %cst_116 = arith.constant dense<0.000000e+00> : vector<32x128xf32>
    %220 = tpu.matmul %218, %219, %cst_116 {dimension_numbers = #tpu.dot_dimension_numbers<[1], [0], [0], [1], [0, 0, 1, 1], [], []>} : vector<32x128xf32>, vector<128x128xf32>, vector<32x128xf32> -> vector<32x128xf32>
    %c0_117 = arith.constant 0 : index
    %c0_118 = arith.constant 0 : index
    %221 = vector.load %arg30[%c0_117, %c0_118] : memref<1x128xf32, #tpu.memory_space<vmem>>, vector<1x128xf32>
    %222 = vector.broadcast %221 : vector<1x128xf32> to vector<32x128xf32>
    %223 = arith.addf %220, %222 : vector<32x128xf32>
    %c0_119 = arith.constant 0 : index
    %c0_120 = arith.constant 0 : index
    %224 = vector.load %arg31[%c0_119, %c0_120] : memref<1x128xf32, #tpu.memory_space<vmem>>, vector<1x128xf32>
    %c0_121 = arith.constant 0 : index
    %c0_122 = arith.constant 0 : index
    %225 = vector.load %arg32[%c0_121, %c0_122] : memref<1x128xf32, #tpu.memory_space<vmem>>, vector<1x128xf32>
    %226 = tpu.iota {dimensions = array<i32: 1>} : vector<32x128xi32>
    %c100_i32_123 = arith.constant 100 : i32
    %227 = vector.broadcast %c100_i32_123 : i32 to vector<32x128xi32>
    %228 = arith.cmpi slt, %226, %227 : vector<32x128xi32>
    %cst_124 = arith.constant dense<0.000000e+00> : vector<32xf32>
    %229 = vector.multi_reduction <add>, %223, %cst_124 [1] : vector<32x128xf32> to vector<32xf32>
    %230 = vector.shape_cast %229 : vector<32xf32> to vector<32x1xf32>
    %cst_125 = arith.constant 0.00999999977 : f32
    %231 = vector.broadcast %cst_125 : f32 to vector<32x1xf32>
    %232 = arith.mulf %230, %231 : vector<32x1xf32>
    %233 = vector.broadcast %232 : vector<32x1xf32> to vector<32x128xf32>
    %234 = arith.subf %223, %233 : vector<32x128xf32>
    %cst_126 = arith.constant 0.000000e+00 : f32
    %235 = vector.broadcast %cst_126 : f32 to vector<32x128xf32>
    %236 = arith.select %228, %234, %235 : vector<32x128xi1>, vector<32x128xf32>
    %237 = arith.mulf %236, %236 : vector<32x128xf32>
    %cst_127 = arith.constant dense<0.000000e+00> : vector<32xf32>
    %238 = vector.multi_reduction <add>, %237, %cst_127 [1] : vector<32x128xf32> to vector<32xf32>
    %239 = vector.shape_cast %238 : vector<32xf32> to vector<32x1xf32>
    %cst_128 = arith.constant 0.00999999977 : f32
    %240 = vector.broadcast %cst_128 : f32 to vector<32x1xf32>
    %241 = arith.mulf %239, %240 : vector<32x1xf32>
    %cst_129 = arith.constant 9.99999974E-6 : f32
    %242 = vector.broadcast %cst_129 : f32 to vector<32x1xf32>
    %243 = arith.addf %241, %242 : vector<32x1xf32>
    %244 = math.rsqrt %243 : vector<32x1xf32>
    %245 = vector.broadcast %244 : vector<32x1xf32> to vector<32x128xf32>
    %246 = arith.mulf %236, %245 : vector<32x128xf32>
    %247 = vector.broadcast %224 : vector<1x128xf32> to vector<32x128xf32>
    %248 = arith.mulf %246, %247 : vector<32x128xf32>
    %249 = vector.broadcast %225 : vector<1x128xf32> to vector<32x128xf32>
    %250 = arith.addf %248, %249 : vector<32x128xf32>
    %cst_130 = arith.constant 0.000000e+00 : f32
    %251 = vector.broadcast %cst_130 : f32 to vector<32x128xf32>
    %252 = arith.maximumf %250, %251 : vector<32x128xf32>
    %c0_131 = arith.constant 0 : index
    %c0_132 = arith.constant 0 : index
    %253 = vector.load %arg33[%c0_131, %c0_132] : memref<128x3xf32, #tpu.memory_space<vmem>>, vector<128x3xf32>
    %cst_133 = arith.constant dense<0.000000e+00> : vector<32x3xf32>
    %254 = tpu.matmul %252, %253, %cst_133 {dimension_numbers = #tpu.dot_dimension_numbers<[1], [0], [0], [1], [0, 0, 1, 1], [], []>} : vector<32x128xf32>, vector<128x3xf32>, vector<32x3xf32> -> vector<32x3xf32>
    %c0_134 = arith.constant 0 : index
    %c0_135 = arith.constant 0 : index
    %255 = vector.load %arg34[%c0_134, %c0_135] : memref<1x3xf32, #tpu.memory_space<vmem>>, vector<1x3xf32>
    %256 = vector.broadcast %255 : vector<1x3xf32> to vector<32x3xf32>
    %257 = arith.addf %254, %256 : vector<32x3xf32>
    %c0_136 = arith.constant 0 : index
    %c0_137 = arith.constant 0 : index
    %258 = vector.load %arg35[%c0_136, %c0_137] : memref<32x3xf32, #tpu.memory_space<vmem>>, vector<32x3xf32>
    tpu.vector_store %arg35[%c0_136, %c0_137], %257 {strides = array<i32>} : memref<32x3xf32, #tpu.memory_space<vmem>>, vector<32x3xf32>,
    return
  }
  func.func @transform_0(%arg0: i32) -> (i32, i32) {
    %c0_i32 = arith.constant 0 : i32
    %c0_i32_0 = arith.constant 0 : i32
    %c0_i32_1 = arith.constant 0 : i32
    return %c0_i32, %c0_i32_0 : i32, i32
  }
  func.func @transform_1(%arg0: i32) -> (i32, i32) {
    %c0_i32 = arith.constant 0 : i32
    %c0_i32_0 = arith.constant 0 : i32
    %c0_i32_1 = arith.constant 0 : i32
    return %c0_i32, %c0_i32_0 : i32, i32
  }
  func.func @transform_2(%arg0: i32) -> (i32, i32) {
    %c0_i32 = arith.constant 0 : i32
    %c0_i32_0 = arith.constant 0 : i32
    %c0_i32_1 = arith.constant 0 : i32
    return %c0_i32, %c0_i32_0 : i32, i32
  }
  func.func @transform_3(%arg0: i32) -> (i32, i32) {
    %c0_i32 = arith.constant 0 : i32
    %c0_i32_0 = arith.constant 0 : i32
    %c0_i32_1 = arith.constant 0 : i32
    return %c0_i32, %c0_i32_0 : i32, i32
  }
  func.func @transform_4(%arg0: i32) -> (i32, i32) {
    %c0_i32 = arith.constant 0 : i32
    %c0_i32_0 = arith.constant 0 : i32
    %c0_i32_1 = arith.constant 0 : i32
    return %c0_i32, %c0_i32_0 : i32, i32
  }
  func.func @transform_5(%arg0: i32) -> (i32, i32) {
    %c0_i32 = arith.constant 0 : i32
    %c0_i32_0 = arith.constant 0 : i32
    %c0_i32_1 = arith.constant 0 : i32
    return %c0_i32, %c0_i32_0 : i32, i32
  }
  func.func @transform_6(%arg0: i32) -> (i32, i32) {
    %c0_i32 = arith.constant 0 : i32
    %c0_i32_0 = arith.constant 0 : i32
    %c0_i32_1 = arith.constant 0 : i32
    return %c0_i32, %c0_i32_0 : i32, i32
  }
  func.func @transform_7(%arg0: i32) -> (i32, i32) {
    %c0_i32 = arith.constant 0 : i32
    %c0_i32_0 = arith.constant 0 : i32
    %c0_i32_1 = arith.constant 0 : i32
    return %c0_i32, %c0_i32_0 : i32, i32
  }
  func.func @transform_8(%arg0: i32) -> (i32, i32) {
    %c0_i32 = arith.constant 0 : i32
    %c0_i32_0 = arith.constant 0 : i32
    %c0_i32_1 = arith.constant 0 : i32
    return %c0_i32, %c0_i32_0 : i32, i32
  }
  func.func @transform_9(%arg0: i32) -> (i32, i32) {
    %c0_i32 = arith.constant 0 : i32
    %c0_i32_0 = arith.constant 0 : i32
    %c0_i32_1 = arith.constant 0 : i32
    return %c0_i32, %c0_i32_0 : i32, i32
  }
  func.func @transform_10(%arg0: i32) -> (i32, i32) {
    %c0_i32 = arith.constant 0 : i32
    %c0_i32_0 = arith.constant 0 : i32
    %c0_i32_1 = arith.constant 0 : i32
    return %c0_i32, %c0_i32_0 : i32, i32
  }
  func.func @transform_11(%arg0: i32) -> (i32, i32) {
    %c0_i32 = arith.constant 0 : i32
    %c0_i32_0 = arith.constant 0 : i32
    %c0_i32_1 = arith.constant 0 : i32
    return %c0_i32, %c0_i32_0 : i32, i32
  }
  func.func @transform_12(%arg0: i32) -> (i32, i32) {
    %c0_i32 = arith.constant 0 : i32
    %c0_i32_0 = arith.constant 0 : i32
    %c0_i32_1 = arith.constant 0 : i32
    return %c0_i32, %c0_i32_0 : i32, i32
  }
  func.func @transform_13(%arg0: i32) -> (i32, i32) {
    %c0_i32 = arith.constant 0 : i32
    %c0_i32_0 = arith.constant 0 : i32
    %c0_i32_1 = arith.constant 0 : i32
    return %c0_i32, %c0_i32_0 : i32, i32
  }
  func.func @transform_14(%arg0: i32) -> (i32, i32) {
    %c0_i32 = arith.constant 0 : i32
    %c0_i32_0 = arith.constant 0 : i32
    %c0_i32_1 = arith.constant 0 : i32
    return %c0_i32, %c0_i32_0 : i32, i32
  }
  func.func @transform_15(%arg0: i32) -> (i32, i32) {
    %c0_i32 = arith.constant 0 : i32
    %c0_i32_0 = arith.constant 0 : i32
    %c0_i32_1 = arith.constant 0 : i32
    return %c0_i32, %c0_i32_0 : i32, i32
  }
  func.func @transform_16(%arg0: i32) -> (i32, i32) {
    %c0_i32 = arith.constant 0 : i32
    %c0_i32_0 = arith.constant 0 : i32
    %c0_i32_1 = arith.constant 0 : i32
    return %c0_i32, %c0_i32_0 : i32, i32
  }
  func.func @transform_17(%arg0: i32) -> (i32, i32) {
    %c0_i32 = arith.constant 0 : i32
    %c0_i32_0 = arith.constant 0 : i32
    %c0_i32_1 = arith.constant 0 : i32
    return %c0_i32, %c0_i32_0 : i32, i32
  }
  func.func @transform_18(%arg0: i32) -> (i32, i32) {
    %c0_i32 = arith.constant 0 : i32
    %c0_i32_0 = arith.constant 0 : i32
    %c0_i32_1 = arith.constant 0 : i32
    return %c0_i32, %c0_i32_0 : i32, i32
  }
  func.func @transform_19(%arg0: i32) -> (i32, i32) {
    %c0_i32 = arith.constant 0 : i32
    %c0_i32_0 = arith.constant 0 : i32
    %c0_i32_1 = arith.constant 0 : i32
    return %c0_i32, %c0_i32_0 : i32, i32
  }
  func.func @transform_20(%arg0: i32) -> (i32, i32) {
    %c0_i32 = arith.constant 0 : i32
    %c0_i32_0 = arith.constant 0 : i32
    %c0_i32_1 = arith.constant 0 : i32
    return %c0_i32, %c0_i32_0 : i32, i32
  }
  func.func @transform_21(%arg0: i32) -> (i32, i32) {
    %c0_i32 = arith.constant 0 : i32
    %c0_i32_0 = arith.constant 0 : i32
    %c0_i32_1 = arith.constant 0 : i32
    return %c0_i32, %c0_i32_0 : i32, i32
  }
  func.func @transform_22(%arg0: i32) -> (i32, i32) {
    %c0_i32 = arith.constant 0 : i32
    %c0_i32_0 = arith.constant 0 : i32
    %c0_i32_1 = arith.constant 0 : i32
    return %c0_i32, %c0_i32_0 : i32, i32
  }
  func.func @transform_23(%arg0: i32) -> (i32, i32) {
    %c0_i32 = arith.constant 0 : i32
    %c0_i32_0 = arith.constant 0 : i32
    %c0_i32_1 = arith.constant 0 : i32
    return %c0_i32, %c0_i32_0 : i32, i32
  }
  func.func @transform_24(%arg0: i32) -> (i32, i32) {
    %c0_i32 = arith.constant 0 : i32
    %c0_i32_0 = arith.constant 0 : i32
    %c0_i32_1 = arith.constant 0 : i32
    return %c0_i32, %c0_i32_0 : i32, i32
  }
  func.func @transform_25(%arg0: i32) -> (i32, i32) {
    %c0_i32 = arith.constant 0 : i32
    %c0_i32_0 = arith.constant 0 : i32
    %c0_i32_1 = arith.constant 0 : i32
    return %c0_i32, %c0_i32_0 : i32, i32
  }
  func.func @transform_26(%arg0: i32) -> (i32, i32) {
    %c0_i32 = arith.constant 0 : i32
    %c0_i32_0 = arith.constant 0 : i32
    %c0_i32_1 = arith.constant 0 : i32
    return %c0_i32, %c0_i32_0 : i32, i32
  }
  func.func @transform_27(%arg0: i32) -> (i32, i32) {
    %c0_i32 = arith.constant 0 : i32
    %c0_i32_0 = arith.constant 0 : i32
    %c0_i32_1 = arith.constant 0 : i32
    return %c0_i32, %c0_i32_0 : i32, i32
  }
  func.func @transform_28(%arg0: i32) -> (i32, i32) {
    %c0_i32 = arith.constant 0 : i32
    %c0_i32_0 = arith.constant 0 : i32
    %c0_i32_1 = arith.constant 0 : i32
    return %c0_i32, %c0_i32_0 : i32, i32
  }
  func.func @transform_29(%arg0: i32) -> (i32, i32) {
    %c0_i32 = arith.constant 0 : i32
    %c0_i32_0 = arith.constant 0 : i32
    %c0_i32_1 = arith.constant 0 : i32
    return %c0_i32, %c0_i32_0 : i32, i32
  }
  func.func @transform_30(%arg0: i32) -> (i32, i32) {
    %c0_i32 = arith.constant 0 : i32
    %c0_i32_0 = arith.constant 0 : i32
    %c0_i32_1 = arith.constant 0 : i32
    return %c0_i32, %c0_i32_0 : i32, i32
  }
  func.func @transform_31(%arg0: i32) -> (i32, i32) {
    %c0_i32 = arith.constant 0 : i32
    %c0_i32_0 = arith.constant 0 : i32
    %c0_i32_1 = arith.constant 0 : i32
    return %c0_i32, %c0_i32_0 : i32, i32
  }
  func.func @transform_32(%arg0: i32) -> (i32, i32) {
    %c0_i32 = arith.constant 0 : i32
    %c0_i32_0 = arith.constant 0 : i32
    %c0_i32_1 = arith.constant 0 : i32
    return %c0_i32, %c0_i32_0 : i32, i32
  }
  func.func @transform_33(%arg0: i32) -> (i32, i32) {
    %c0_i32 = arith.constant 0 : i32
    %c0_i32_0 = arith.constant 0 : i32
    %c0_i32_1 = arith.constant 0 : i32
    return %c0_i32, %c0_i32_0 : i32, i32
  }
  func.func @transform_34(%arg0: i32) -> (i32, i32) {
    %c0_i32 = arith.constant 0 : i32
    %c0_i32_0 = arith.constant 0 : i32
    %c0_i32_1 = arith.constant 0 : i32
    return %c0_i32, %c0_i32_0 : i32, i32
  }
  func.func @transform_35(%arg0: i32) -> (i32, i32) {
    %c0_i32 = arith.constant 0 : i32
    %c0_i32_0 = arith.constant 0 : i32
    %c0_i32_1 = arith.constant 0 : i32
    return %c0_i32, %c0_i32_0 : i32, i32
  }
}

</mosaic_0001>

<bundles_post_ra>
// kernel: autoencoder_forward.1
= control target key start
LH: loop header
LB: loop body
LE: loop exit
PB: predicated region body
PF: predicated region fallthrough
CT: control target
= control target key end

     0   :  { %s1566_s6 = smov 1   ;;  %s1567_s10 = smov 2   ;;  %s2092_s0 = inlined_call_operand.smem [shape: u32[36], index: -1, kind: input, shape index: {}] }
   0x1   :  { %s1616_s5 = sld [smem:[%s2092_s0]]   ;;  %s1568_s14 = smov 3  }
   0x2   :  { %s1621_s9 = sld [smem:[%s2092_s0 + %s1566_s6]]   ;;  %s1569_s18 = smov 4  }
   0x3   :  { %s1626_s13 = sld [smem:[%s2092_s0 + %s1567_s10]]   ;;  %s1570_s22 = smov 5  }
   0x4   :  { %s1631_s17 = sld [smem:[%s2092_s0 + %s1568_s14]]   ;;  %s1571_s26 = smov 6  }
   0x5   :  { %s1636_s21 = sld [smem:[%s2092_s0 + %s1569_s18]]   ;;  %s1572_s30 = smov 7  }
   0x6   :  { %s1641_s25 = sld [smem:[%s2092_s0 + %s1570_s22]]   ;;  %s1573_s4 = smov 8  }
   0x7   :  { %s1646_s29 = sld [smem:[%s2092_s0 + %s1571_s26]]   ;;  %s1574_s10 = smov 9  }
   0x8   :  { %s1651_s3 = sld [smem:[%s2092_s0 + %s1572_s30]]   ;;  %s1575_s15 = smov 10  }
   0x9   :  { %s1656_s8 = sld [smem:[%s2092_s0 + %s1573_s4]]   ;;  %s1576_s20 = smov 11  }
   0xa   :  { %s1661_s14 = sld [smem:[%s2092_s0 + %s1574_s10]]   ;;  %s1577_s26 = smov 12  }
   0xb   :  { %s1666_s19 = sld [smem:[%s2092_s0 + %s1575_s15]]   ;;  %s1578_s1 = smov 13  }
   0xc   :  { %s1671_s24 = sld [smem:[%s2092_s0 + %s1576_s20]]   ;;  %s1579_s7 = smov 14  }
   0xd   :  { %s1676_s30 = sld [smem:[%s2092_s0 + %s1577_s26]]   ;;  %s1580_s15 = smov 15  }
   0xe   :  { %s1681_s6 = sld [smem:[%s2092_s0 + %s1578_s1]]   ;;  %s1581_s22 = smov 16  }
   0xf   :  { %s1686_s12 = sld [smem:[%s2092_s0 + %s1579_s7]]   ;;  %s1582_s28 = smov 17  }
  0x10   :  { %s1691_s20 = sld [smem:[%s2092_s0 + %s1580_s15]]   ;;  %s1583_s7 = smov 18  }
  0x11   :  { %2094 = sst [smem:[#allocation12_spill]] %s1666_s19  ;;  %s1584_s15 = smov 19  }
  0x12   :  { %s1696_s27 = sld [smem:[%s2092_s0 + %s1581_s22]]   ;;  %s1585_s22 = smov 20  }
  0x13   :  { %2095 = sst [smem:[#allocation13_spill]] %s1676_s30 }
  0x14   :  { %s1701_s4 = sld [smem:[%s2092_s0 + %s1582_s28]]   ;;  %s1586_s28 = smov 21  }
  0x15   :  { %2096 = sst [smem:[#allocation14_spill]] %s1686_s12 }
  0x16   :  { %2097 = sst [smem:[#allocation15_spill]] %s1691_s20 }
  0x17   :  { %s1706_s12 = sld [smem:[%s2092_s0 + %s1583_s7]]   ;;  %s1587_s7 = smov 22  }
  0x18   :  { %2098 = sst [smem:[#allocation16_spill]] %s1696_s27 }
  0x19   :  { %s1711_s20 = sld [smem:[%s2092_s0 + %s1584_s15]]   ;;  %s1588_s15 = smov 23  }
  0x1a   :  { %s1716_s27 = sld [smem:[%s2092_s0 + %s1585_s22]]   ;;  %s1589_s22 = smov 24  }
  0x1b   :  { %s1721_s30 = sld [smem:[%s2092_s0 + %s1586_s28]]   ;;  %s1590_s28 = smov 25  }
  0x1d   :  { %2099 = sst [smem:[#allocation17_spill]] %s1706_s12 }
  0x1e   :  { %s1726_s12 = sld [smem:[%s2092_s0 + %s1587_s7]]   ;;  %s1591_s7 = smov 26  }
  0x1f   :  { %2100 = sst [smem:[#allocation18_spill]] %s1711_s20 }
  0x20   :  { %2101 = sst [smem:[#allocation19_spill]] %s1716_s27 }
  0x21   :  { %2102 = sst [smem:[#allocation20_spill]] %s1721_s30 }
  0x22   :  { %s1731_s20 = sld [smem:[%s2092_s0 + %s1588_s15]]   ;;  %s1592_s15 = smov 27  }
  0x23   :  { %s1736_s27 = sld [smem:[%s2092_s0 + %s1589_s22]]   ;;  %s1593_s22 = smov 28  }
  0x24   :  { %2103 = sst [smem:[#allocation21_spill]] %s1726_s12 }
  0x25   :  { %s1741_s30 = sld [smem:[%s2092_s0 + %s1590_s28]]   ;;  %s1594_s28 = smov 29  }
  0x26   :  { %s1746_s12 = sld [smem:[%s2092_s0 + %s1591_s7]]   ;;  %s1595_s7 = smov 30  }
  0x28   :  { %2104 = sst [smem:[#allocation22_spill]] %s1731_s20 }
  0x29   :  { %2105 = sst [smem:[#allocation23_spill]] %s1736_s27 }
  0x2a   :  { %s1751_s20 = sld [smem:[%s2092_s0 + %s1592_s15]]   ;;  %s1596_s15 = smov 31  }
  0x2b   :  { %2106 = sst [smem:[#allocation24_spill]] %s1741_s30 }
  0x2c   :  { %2107 = sst [smem:[#allocation25_spill]] %s1746_s12 }
  0x2d   :  { %s1756_s27 = sld [smem:[%s2092_s0 + %s1593_s22]]   ;;  %s1597_s22 = smov 32  }
  0x2e   :  { %s1761_s30 = sld [smem:[%s2092_s0 + %s1594_s28]]   ;;  %s1598_s28 = smov 33  }
  0x2f   :  { %s1766_s12 = sld [smem:[%s2092_s0 + %s1595_s7]]   ;;  %s1599_s7 = smov 34  }
  0x30   :  { %2108 = sst [smem:[#allocation26_spill]] %s1751_s20 }
  0x31   :  { %s1771_s20 = sld [smem:[%s2092_s0 + %s1596_s15]]   ;;  %s1600_s15 = smov 35  }
  0x32   :  { %s1776_s19 = sld [smem:[%s2092_s0 + %s1597_s22]]  }
  0x34   :  { %2109 = sst [smem:[#allocation27_spill]] %s1761_s30 }
  0x35   :  { %2110 = sst [smem:[#allocation28_spill]] %s1766_s12 }
  0x36   :  { %s1781_s30 = sld [smem:[%s2092_s0 + %s1598_s28]]  }
  0x37   :  { %2111 = sst [smem:[#allocation29_spill]] %s1771_s20 }
  0x38   :  { %s1786_s12 = sld [smem:[%s2092_s0 + %s1599_s7]]  }
  0x39   :  { %s1791_s20 = sld [smem:[%s2092_s0 + %s1600_s15]]  }
  0x3a   :  { %77 = vsyncpa [#allocation3], 0 }
  0x3b   :  { %78 = vsyncpa [#allocation6], 0 }
  0x3c   :  { %79 = vsyncpa [#allocation4], 0  ;;  %s129_s22 = sshll.u32 %s1701_s4, 4  ;;  %s1601_s23 = smov [#allocation5]   ;;  %s130_s22 = int_to_ptr.hbm [resolvable:$true] %s129_s22 }
  0x3d   :  { %s131_s26 = sshll.u32 %s1601_s23, 4  ;;  %s110_s28 = sshll.u32 %s1681_s6, 4  ;;  %s132_s26 = int_to_ptr.vmem [resolvable:$true] %s131_s26  ;;  %s111_s28 = int_to_ptr.hbm [resolvable:$true] %s110_s28 }
  0x3e   :  { %s1464_s1 = sshra.s32 %s130_s22, 4  ;;  %s1468_s7 = scalar_lea.hbm %s1701_s4, 128  ;;  %s1465_s1 = int_to_ptr.hbm [resolvable:$true] %s1464_s1 }
  0x3f   :  { %s1466_s2 = scalar_lea.hbm %s1465_s1, 128  ;;  %p1469_p1 = scmp.lt.s32.totalorder %s1465_s1, %s1701_s4 }
  0x40   :  { %p1467_p0 = scmp.ne.s32.totalorder %s1465_s1, %s1466_s2  ;;  %p1470_p2 = scmp.lt.s32.totalorder %s1468_s7, %s1466_s2 }
  0x42   :  { %p1471_p3 = por %p1470_p2, %p1469_p1 }
  0x44   :  { %p1472_p4 = pnand %p1471_p3, %p1467_p0 }
  0x46   :  { %1475 = shalt.err (!%p1472_p4)
}
  0x47   :  { %s1602_s0 = smov 128   ;;  %s1603_s10 = smov 8  }
  0x48   :  { %137 = dma.hbm_to_vmem [thread:$0]  %s130_s22, 2048, %s132_s26, [#allocation6], %s1602_s0, %s1602_s0, %s1603_s10  }
  0x49   :  { %s1604_s11 = smov [#allocation2]   ;;  %s162_s16 = sshll.u32 %s1756_s27, 4  ;;  %s163_s16 = int_to_ptr.hbm [resolvable:$true] %s162_s16 }
  0x4a   :  { %s112_s15 = sshll.u32 %s1604_s11, 4  ;;  %s1488_s18 = sshra.s32 %s111_s28, 4  ;;  %s113_s15 = int_to_ptr.vmem [resolvable:$true] %s112_s15  ;;  %s1489_s18 = int_to_ptr.hbm [resolvable:$true] %s1488_s18 }
  0x4b   :  { %s1490_s4 = scalar_lea.hbm %s1489_s18, 128  ;;  %s1492_s23 = scalar_lea.hbm %s1681_s6, 128 }
  0x4c   :  { %p1491_p5 = scmp.ne.s32.totalorder %s1489_s18, %s1490_s4  ;;  %p1493_p6 = scmp.lt.s32.totalorder %s1489_s18, %s1681_s6 }
  0x4d   :  { %p1494_p7 = scmp.lt.s32.totalorder %s1492_s23, %s1490_s4 }
  0x4f   :  { %p1495_p8 = por %p1494_p7, %p1493_p6 }
  0x51   :  { %p1496_p9 = pnand %p1495_p8, %p1491_p5 }
  0x53   :  { %1499 = shalt.err (!%p1496_p9)
}
  0x54   :  { %118 = dma.hbm_to_vmem [thread:$0]  %s111_s28, 2048, %s113_s15, [#allocation3], %s1602_s0, %s1602_s0, %s1603_s10  }
  0x55   :  { %s1605_s22 = smov [#allocation7]   ;;  %s1512_s1 = sshra.s32 %s163_s16, 4  ;;  %s1513_s1 = int_to_ptr.hbm [resolvable:$true] %s1512_s1 }
  0x56   :  { %s164_s26 = sshll.u32 %s1605_s22, 4  ;;  %s1514_s2 = scalar_lea.hbm %s1513_s1, 128  ;;  %s165_s26 = int_to_ptr.vmem [resolvable:$true] %s164_s26 }
  0x57   :  { %p1515_p10 = scmp.ne.s32.totalorder %s1513_s1, %s1514_s2  ;;  %s1516_s7 = scalar_lea.hbm %s1756_s27, 128 }
  0x58   :  { %p1517_p11 = scmp.lt.s32.totalorder %s1513_s1, %s1756_s27  ;;  %p1518_p12 = scmp.lt.s32.totalorder %s1516_s7, %s1514_s2 }
  0x5a   :  { %p1519_p13 = por %p1518_p12, %p1517_p11 }
  0x5c   :  { %p1520_p0 = pnand %p1519_p13, %p1515_p10 }
  0x5e   :  { %1523 = shalt.err (!%p1520_p0)
}
  0x5f   :  { %170 = dma.hbm_to_vmem [thread:$0]  %s163_s16, 2048, %s165_s26, [#allocation6], %s1602_s0, %s1602_s0, %s1603_s10  }
  0x60   :  { %1560 = dma.done.wait [#allocation3], 2048  }
  0x61   :  { %1561 = vsyncadd [#allocation3], 4294965248 }
  0x62   :  { %1562 = dma.done.wait [#allocation6], 4096  }
  0x63   :  { %1563 = vsyncadd [#allocation6], 4294963200  ;;  %vm216_vm0 = vcmask 1042432   ;;  %vm203_vm1 = vcmask 23552   ;;  %v202_v0 = vld [vmem:[%s1631_s17] sm:$0x7]  ;;  %v303_v27 = vlaneseq }
  0x64   :  { %v201_v1 = vld [vmem:[%s1626_s13] sm:$0x7]  ;;  %1338 = vmatpush.msk.msra.mxu2 %vm216_vm0, %v202_v0  ;;  %v198_v4 = vld [vmem:[%s1621_s9 + $0x8] sm:$0xff]  ;;  %v199_v6 = vld [vmem:[%s1621_s9 + $0x10] sm:$0xff]  ;;  %s2113_s13 = sld [smem:[#allocation13_spill]]  ;;  %s1290_s18 = sshll.u32 %s1791_s20, 4  ;;  %s1291_s18 = int_to_ptr.hbm [resolvable:$true] %s1290_s18 }
  0x65   :  { %v197_v2 = vld [vmem:[%s1621_s9] sm:$0xff]  ;;  %1343 = vmatpush.msk.msra.mxu3 %vm216_vm0, %v201_v1  ;;  %v194_v5 = vld [vmem:[%s1616_s5 + $0x8] sm:$0xff]  ;;  %v195_v7 = vld [vmem:[%s1616_s5 + $0x10] sm:$0xff]  ;;  %v1833_v28 = vand.u32 127, %v303_v27  ;;  %s2116_s17 = sld [smem:[#allocation14_spill]]  ;;  %s1548_s4 = sshra.s32 %s1291_s18, 4  ;;  %s1549_s4 = int_to_ptr.hbm [resolvable:$true] %s1548_s4 }
  0x66   :  { %v193_v3 = vld [vmem:[%s1616_s5] sm:$0xff]  ;;  %1339 = vmatmul.msk.f32.vlgmr.msra.gmra.mxu2 %vm203_vm1, %v197_v2  ;;  %v200_v8 = vld [vmem:[%s1621_s9 + $0x18] sm:$0xff]  ;;  %v422_v50 = vld [vmem:[%s1651_s3 + $0x70] sm:$0xff]  ;;  %s2124_s6 = sld [smem:[#allocation21_spill]]  ;;  %s1550_s23 = scalar_lea.hbm %s1549_s4, 4 }
  0x67   :  { %1344 = vmatmul.msk.f32.vlgmr.msra.gmra.mxu3 %vm203_vm1, %v193_v3  ;;  %v196_v9 = vld [vmem:[%s1616_s5 + $0x18] sm:$0xff]  ;;  %v1403_v10 = vld [vmem:[%s1636_s21] ss:$0 sm:$0xff]  ;;  %vm305_vm2 = vcmp.lt.s32.totalorder %v1833_v28, 100  ;;  %v421_v51 = vld [vmem:[%s1651_s3 + $0x68] sm:$0xff]  ;;  %s2112_s5 = sld [smem:[#allocation12_spill]]  ;;  %p1551_p1 = scmp.ne.s32.totalorder %s1549_s4, %s1550_s23 }
  0x68   :  { %v423_v30 = vld [vmem:[%s1651_s3 + $0x78] sm:$0xff]  ;;  %v420_v52 = vld [vmem:[%s1651_s3 + $0x60] sm:$0xff]  ;;  %v418_v54 = vld [vmem:[%s1651_s3 + $0x50] sm:$0xff]  ;;  %s2117_s21 = sld [smem:[#allocation15_spill]]  ;;  %s1552_s22 = scalar_lea.hbm %s1791_s20, 4 }
  0x69   :  { %428 = vmatpush.msrb.mxu2 %v423_v30  ;;  %v419_v53 = vld [vmem:[%s1651_s3 + $0x58] sm:$0xff]  ;;  %v417_v55 = vld [vmem:[%s1651_s3 + $0x48] sm:$0xff]  ;;  %v416_v56 = vld [vmem:[%s1651_s3 + $0x40] sm:$0xff]  ;;  %s2125_s27 = sld [smem:[#allocation23_spill]]  ;;  %p1553_p2 = scmp.lt.s32.totalorder %s1549_s4, %s1791_s20 }
  0x6a   :  { %v415_v57 = vld [vmem:[%s1651_s3 + $0x38] sm:$0xff]  ;;  %v414_v58 = vld [vmem:[%s1651_s3 + $0x30] sm:$0xff]  ;;  %v413_v59 = vld [vmem:[%s1651_s3 + $0x28] sm:$0xff]  ;;  %s2126_s28 = sld [smem:[#allocation24_spill]]  ;;  %p1554_p3 = scmp.lt.s32.totalorder %s1552_s22, %s1550_s23 }
  0x6b   :  { %429 = vmatpush.msrb.mxu2 %v422_v50  ;;  %v412_v60 = vld [vmem:[%s1651_s3 + $0x20] sm:$0xff]  ;;  %v411_v61 = vld [vmem:[%s1651_s3 + $0x18] sm:$0xff]  ;;  %v410_v62 = vld [vmem:[%s1651_s3 + $0x10] sm:$0xff]  ;;  %s2128_s0 = sld [smem:[#allocation26_spill]] }
  0x6c   :  { %v409_v63 = vld [vmem:[%s1651_s3 + $0x8] sm:$0xff]  ;;  %v408_v0 = vld [vmem:[%s1651_s3] sm:$0xff]  ;;  %s2120_s3 = sld [smem:[#allocation20_spill]]  ;;  %p1555_p4 = por %p1554_p3, %p1553_p2 }
  0x6d   :  { %430 = vmatpush.msrb.mxu2 %v421_v51  ;;  %s2129_s10 = sld [smem:[#allocation27_spill]] }
  0x6e   :  { %1340 = vmatmul.msk.f32.gmra.mxu2 %vm203_vm1, %v198_v4  ;;  %s2130_s11 = sld [smem:[#allocation28_spill]]  ;;  %p1556_p5 = pnand %p1555_p4, %p1551_p1 }
  0x6f   :  { %1345 = vmatmul.msk.f32.gmra.mxu3 %vm203_vm1, %v194_v5  ;;  %431 = vmatpush.msrb.mxu2 %v420_v52  ;;  %s2131_s15 = sld [smem:[#allocation29_spill]] }
  0x71   :  { %432 = vmatpush.msrb.mxu2 %v419_v53 }
  0x73   :  { %433 = vmatpush.msrb.mxu2 %v418_v54 }
  0x75   :  { %434 = vmatpush.msrb.mxu2 %v417_v55 }
  0x76   :  { %1341 = vmatmul.msk.f32.gmra.mxu2 %vm203_vm1, %v199_v6 }
  0x77   :  { %1346 = vmatmul.msk.f32.gmra.mxu3 %vm203_vm1, %v195_v7  ;;  %435 = vmatpush.msrb.mxu2 %v416_v56 }
  0x79   :  { %436 = vmatpush.msrb.mxu2 %v415_v57 }
  0x7b   :  { %437 = vmatpush.msrb.mxu2 %v414_v58 }
  0x7d   :  { %438 = vmatpush.msrb.mxu2 %v413_v59 }
  0x7e   :  { %1342 = vmatmul.msk.f32.gmra.mxu2 %vm203_vm1, %v200_v8 }
  0x7f   :  { %1347 = vmatmul.msk.f32.gmra.mxu3 %vm203_vm1, %v196_v9  ;;  %439 = vmatpush.msrb.mxu2 %v412_v60 }
  0x81   :  { %440 = vmatpush.msrb.mxu2 %v411_v61 }
  0x83   :  { %441 = vmatpush.msrb.mxu2 %v410_v62 }
  0x85   :  { %442 = vmatpush.msrb.mxu2 %v409_v63 }
  0x87   :  { %443 = vmatpush.msrb.mxu2 %v408_v0 }
  0xe9   :  { %v237_v11 = vpop.f32.mrf.mxu2 }
  0xea   :  { %v281_v12 = vpop.f32.mrf.mxu3 }
  0xeb   :  { %v282_v13 = vadd.f32 %v281_v12, %v237_v11 }
  0xed   :  { %v297_v14 = vadd.f32 %v1403_v10, %v282_v13 }
  0xef   :  { %306 = vadd.xlane.f32.xlu0 %v297_v14 }
  0xf1   :  { %v240_v15 = vpop.f32.mrf.mxu2 }
  0xf2   :  { %v284_v16 = vpop.f32.mrf.mxu3 }
  0xf3   :  { %v285_v17 = vadd.f32 %v284_v16, %v240_v15 }
  0xf5   :  { %v298_v18 = vadd.f32 %v1403_v10, %v285_v17 }
  0xf7   :  { %308 = vadd.xlane.f32.xlu0 %v298_v18 }
  0xf9   :  { %v243_v19 = vpop.f32.mrf.mxu2 }
  0xfa   :  { %v287_v20 = vpop.f32.mrf.mxu3 }
  0xfb   :  { %v288_v21 = vadd.f32 %v287_v20, %v243_v19 }
  0xfd   :  { %v299_v22 = vadd.f32 %v1403_v10, %v288_v21 }
  0xff   :  { %310 = vadd.xlane.f32.xlu1 %v299_v22 }
 0x101   :  { %v246_v23 = vpop.f32.mrf.mxu2 }
 0x102   :  { %v290_v24 = vpop.f32.mrf.mxu3 }
 0x103   :  { %v291_v25 = vadd.f32 %v290_v24, %v246_v23 }
 0x105   :  { %v300_v26 = vadd.f32 %v1403_v10, %v291_v25 }
 0x107   :  { %312 = vadd.xlane.f32.xlu1 %v300_v26 }
 0x162   :  { %v307_v29 = vpop.xlane.xlu0 %306 }
 0x163   :  { %v314_v31 = vmul.f32 0.01, %v307_v29 }
 0x165   :  { %v318_v32 = vsub.f32 %v297_v14, %v314_v31 }
 0x167   :  { %v1839_v33 = vsel %vm305_vm2, %v318_v32, 0.0 }
 0x168   :  { %v326_v34 = vmul.f32 %v1839_v33, %v1839_v33 }
 0x16a   :  { %330 = vadd.xlane.f32.xlu2 %v326_v34  ;;  %v309_v35 = vpop.xlane.xlu0 %308 }
 0x16b   :  { %v315_v36 = vmul.f32 0.01, %v309_v35 }
 0x16d   :  { %v319_v37 = vsub.f32 %v298_v18, %v315_v36  ;;  %v1404_v18 = vld [vmem:[%s1641_s25] ss:$0 sm:$0xff]  ;;  %s2118_s25 = sld [smem:[#allocation16_spill]] }
 0x16f   :  { %v1845_v38 = vsel %vm305_vm2, %v319_v37, 0.0 }
 0x170   :  { %v327_v39 = vmul.f32 %v1845_v38, %v1845_v38 }
 0x172   :  { %v311_v40 = vpop.xlane.xlu1 %310  ;;  %332 = vadd.xlane.f32.xlu2 %v327_v39 }
 0x173   :  { %v316_v41 = vmul.f32 0.01, %v311_v40 }
 0x175   :  { %v320_v42 = vsub.f32 %v299_v22, %v316_v41  ;;  %v1405_v22 = vld [vmem:[%s1646_s29] ss:$0 sm:$0xff]  ;;  %s2119_s29 = sld [smem:[#allocation17_spill]] }
 0x177   :  { %v1851_v43 = vsel %vm305_vm2, %v320_v42, 0.0 }
 0x178   :  { %v328_v44 = vmul.f32 %v1851_v43, %v1851_v43 }
 0x17a   :  { %v313_v45 = vpop.xlane.xlu1 %312  ;;  %334 = vadd.xlane.f32.xlu0 %v328_v44 }
 0x17b   :  { %v317_v46 = vmul.f32 0.01, %v313_v45 }
 0x17d   :  { %v321_v47 = vsub.f32 %v300_v26, %v317_v46 }
 0x17f   :  { %v1857_v48 = vsel %vm305_vm2, %v321_v47, 0.0 }
 0x180   :  { %v329_v49 = vmul.f32 %v1857_v48, %v1857_v48 }
 0x182   :  { %336 = vadd.xlane.f32.xlu1 %v329_v49 }
 0x1dd   :  { %v331_v1 = vpop.xlane.xlu2 %330 }
 0x1de   :  { %v338_v2 = vmul.f32 0.01, %v331_v1 }
 0x1e0   :  { %v342_v3 = vadd.f32 1e-05, %v338_v2 }
 0x1e2   :  { %1424 = vrsqrt.f32 %v342_v3  ;;  %vm352_vm4 = vweird.f32 %v342_v3 }
 0x1e5   :  { %v333_v4 = vpop.xlane.xlu2 %332 }
 0x1e6   :  { %v339_v5 = vmul.f32 0.01, %v333_v4 }
 0x1e8   :  { %v1425_v6 = vpop.eup %1424  ;;  %v343_v7 = vadd.f32 1e-05, %v339_v5 }
 0x1e9   :  { %v347_v8 = vmul.f32 %v1425_v6, %v342_v3  ;;  %vm353_vm3 = vweird.f32 %v1425_v6 }
 0x1ea   :  { %1426 = vrsqrt.f32 %v343_v7  ;;  %vm354_vm5 = vmor %vm352_vm4, %vm353_vm3  ;;  %vm362_vm7 = vweird.f32 %v343_v7 }
 0x1eb   :  { %v348_v9 = vmul.f32 %v1425_v6, %v347_v8 }
 0x1ed   :  { %v349_v10 = vmul.f32 0.5, %v348_v9  ;;  %v335_v11 = vpop.xlane.xlu0 %334 }
 0x1ee   :  { %v340_v12 = vmul.f32 0.01, %v335_v11 }
 0x1ef   :  { %v350_v13 = vsub.f32 1.5, %v349_v10 }
 0x1f0   :  { %v1427_v14 = vpop.eup %1426  ;;  %v344_v15 = vadd.f32 1e-05, %v340_v12 }
 0x1f1   :  { %v351_v16 = vmul.f32 %v1425_v6, %v350_v13  ;;  %v357_v17 = vmul.f32 %v1427_v14, %v343_v7  ;;  %vm363_vm6 = vweird.f32 %v1427_v14 }
 0x1f2   :  { %1428 = vrsqrt.f32 %v344_v15  ;;  %vm364_vm8 = vmor %vm362_vm7, %vm363_vm6  ;;  %vm372_vm10 = vweird.f32 %v344_v15 }
 0x1f3   :  { %v355_v19 = vsel %vm354_vm5, %v1425_v6, %v351_v16  ;;  %v358_v20 = vmul.f32 %v1427_v14, %v357_v17 }
 0x1f4   :  { %v386_v21 = vmul.f32 %v355_v19, %v1839_v33 }
 0x1f5   :  { %v359_v23 = vmul.f32 0.5, %v358_v20  ;;  %v337_v24 = vpop.xlane.xlu1 %336 }
 0x1f6   :  { %v341_v25 = vmul.f32 0.01, %v337_v24  ;;  %v393_v26 = vmul.f32 %v1404_v18, %v386_v21 }
 0x1f7   :  { %v360_v29 = vsub.f32 1.5, %v359_v23 }
 0x1f8   :  { %v1429_v30 = vpop.eup %1428  ;;  %v345_v31 = vadd.f32 1e-05, %v341_v25  ;;  %v400_v32 = vadd.f32 %v1405_v22, %v393_v26 }
 0x1f9   :  { %v361_v34 = vmul.f32 %v1427_v14, %v360_v29  ;;  %v367_v35 = vmul.f32 %v1429_v30, %v344_v15  ;;  %vm373_vm9 = vweird.f32 %v1429_v30  ;;  %v575_v29 = vld [vmem:[%s1671_s24 + $0x70] sm:$0xff] }
 0x1fa   :  { %1430 = vrsqrt.f32 %v345_v31  ;;  %v404_v36 = vmax.f32 %v400_v32, 0.0  ;;  %vm374_vm11 = vmor %vm372_vm10, %vm373_vm9  ;;  %vm382_vm13 = vweird.f32 %v345_v31  ;;  %v572_v32 = vld [vmem:[%s1671_s24 + $0x58] sm:$0xff] }
 0x1fb   :  { %v368_v37 = vmul.f32 %v1429_v30, %v367_v35  ;;  %v365_v39 = vsel %vm364_vm8, %v1427_v14, %v361_v34  ;;  %v571_v34 = vld [vmem:[%s1671_s24 + $0x50] sm:$0xff]  ;;  %v570_v35 = vld [vmem:[%s1671_s24 + $0x48] sm:$0xff] }
 0x1fc   :  { %444 = vmatmul.f32.vlgmr.msrb.gmra.mxu2 %v404_v36  ;;  %v387_v33 = vmul.f32 %v365_v39, %v1845_v38  ;;  %v569_v36 = vld [vmem:[%s1671_s24 + $0x40] sm:$0xff]  ;;  %v567_v39 = vld [vmem:[%s1671_s24 + $0x30] sm:$0xff] }
 0x1fd   :  { %v369_v40 = vmul.f32 0.5, %v368_v37  ;;  %v568_v37 = vld [vmem:[%s1671_s24 + $0x38] sm:$0xff] }
 0x1fe   :  { %v394_v41 = vmul.f32 %v1404_v18, %v387_v33  ;;  %v566_v33 = vld [vmem:[%s1671_s24 + $0x28] sm:$0xff] }
 0x1ff   :  { %v370_v42 = vsub.f32 1.5, %v369_v40  ;;  %v565_v40 = vld [vmem:[%s1671_s24 + $0x20] sm:$0xff] }
 0x200   :  { %v1431_v44 = vpop.eup %1430  ;;  %v401_v45 = vadd.f32 %v1405_v22, %v394_v41  ;;  %v564_v41 = vld [vmem:[%s1671_s24 + $0x18] sm:$0xff] }
 0x201   :  { %v371_v46 = vmul.f32 %v1429_v30, %v370_v42  ;;  %v377_v47 = vmul.f32 %v1431_v44, %v345_v31  ;;  %vm383_vm12 = vweird.f32 %v1431_v44  ;;  %v573_v31 = vld [vmem:[%s1671_s24 + $0x60] sm:$0xff]  ;;  %v563_v42 = vld [vmem:[%s1671_s24 + $0x10] sm:$0xff] }
 0x202   :  { %v405_v49 = vmax.f32 %v401_v45, 0.0  ;;  %vm384_vm14 = vmor %vm382_vm13, %vm383_vm12  ;;  %v561_v45 = vld [vmem:[%s1671_s24] sm:$0xff] }
 0x203   :  { %v378_v50 = vmul.f32 %v1431_v44, %v377_v47  ;;  %v375_v51 = vsel %vm374_vm11, %v1429_v30, %v371_v46  ;;  %v574_v30 = vld [vmem:[%s1671_s24 + $0x68] sm:$0xff] }
 0x204   :  { %447 = vmatmul.f32.gmra.mxu2 %v405_v49  ;;  %v388_v52 = vmul.f32 %v375_v51, %v1851_v43  ;;  %v1406_v43 = vld [vmem:[%s1656_s8] ss:$0 sm:$0xff]  ;;  %s2121_s8 = sld [smem:[#allocation18_spill]] }
 0x205   :  { %v379_v53 = vmul.f32 0.5, %v378_v50 }
 0x206   :  { %v395_v54 = vmul.f32 %v1404_v18, %v388_v52 }
 0x207   :  { %v380_v38 = vsub.f32 1.5, %v379_v53 }
 0x208   :  { %v402_v55 = vadd.f32 %v1405_v22, %v395_v54 }
 0x209   :  { %v381_v56 = vmul.f32 %v1431_v44, %v380_v38 }
 0x20a   :  { %v406_v57 = vmax.f32 %v402_v55, 0.0 }
 0x20b   :  { %v385_v58 = vsel %vm384_vm14, %v1431_v44, %v381_v56  ;;  %v562_v44 = vld [vmem:[%s1671_s24 + $0x8] sm:$0xff] }
 0x20c   :  { %450 = vmatmul.f32.gmra.mxu2 %v406_v57  ;;  %v389_v59 = vmul.f32 %v385_v58, %v1857_v48  ;;  %v576_v48 = vld [vmem:[%s1671_s24 + $0x78] sm:$0xff]  ;;  %s2123_s24 = sld [smem:[#allocation22_spill]] }
 0x20d   :  { %581 = vmatpush.msrb.mxu3 %v576_v48 }
 0x20e   :  { %v396_v60 = vmul.f32 %v1404_v18, %v389_v59 }
 0x20f   :  { %582 = vmatpush.msrb.mxu3 %v575_v29 }
 0x210   :  { %v403_v61 = vadd.f32 %v1405_v22, %v396_v60 }
 0x211   :  { %583 = vmatpush.msrb.mxu3 %v574_v30 }
 0x212   :  { %v407_v62 = vmax.f32 %v403_v61, 0.0 }
 0x213   :  { %584 = vmatpush.msrb.mxu3 %v573_v31 }
 0x214   :  { %453 = vmatmul.f32.gmra.mxu2 %v407_v62 }
 0x215   :  { %585 = vmatpush.msrb.mxu3 %v572_v32 }
 0x217   :  { %586 = vmatpush.msrb.mxu3 %v571_v34 }
 0x219   :  { %587 = vmatpush.msrb.mxu3 %v570_v35 }
 0x21b   :  { %588 = vmatpush.msrb.mxu3 %v569_v36 }
 0x21d   :  { %589 = vmatpush.msrb.mxu3 %v568_v37 }
 0x21f   :  { %590 = vmatpush.msrb.mxu3 %v567_v39 }
 0x221   :  { %591 = vmatpush.msrb.mxu3 %v566_v33 }
 0x223   :  { %592 = vmatpush.msrb.mxu3 %v565_v40 }
 0x225   :  { %593 = vmatpush.msrb.mxu3 %v564_v41 }
 0x227   :  { %594 = vmatpush.msrb.mxu3 %v563_v42 }
 0x229   :  { %595 = vmatpush.msrb.mxu3 %v562_v44 }
 0x22b   :  { %596 = vmatpush.msrb.mxu3 %v561_v45  ;;  %v658_v45 = vld [vmem:[#allocation2 + $0x78] sm:$0xff] }
 0x22c   :  { %663 = vmatpush.msra.mxu1 %v658_v45 }
 0x27f   :  { %v445_v63 = vpop.f32.mrf.mxu2 }
 0x280   :  { %v446_v0 = vadd.f32 %v1406_v43, %v445_v63 }
 0x282   :  { %459 = vadd.xlane.f32.xlu2 %v446_v0 }
 0x287   :  { %v448_v1 = vpop.f32.mrf.mxu2 }
 0x288   :  { %v449_v2 = vadd.f32 %v1406_v43, %v448_v1 }
 0x28a   :  { %461 = vadd.xlane.f32.xlu0 %v449_v2 }
 0x28f   :  { %v451_v3 = vpop.f32.mrf.mxu2 }
 0x290   :  { %v452_v4 = vadd.f32 %v1406_v43, %v451_v3 }
 0x292   :  { %463 = vadd.xlane.f32.xlu1 %v452_v4 }
 0x297   :  { %v454_v5 = vpop.f32.mrf.mxu2 }
 0x298   :  { %v455_v6 = vadd.f32 %v1406_v43, %v454_v5  ;;  %v1407_v43 = vld [vmem:[%s1661_s14] ss:$0 sm:$0xff]  ;;  %s2122_s14 = sld [smem:[#allocation19_spill]] }
 0x29a   :  { %465 = vadd.xlane.f32.xlu2 %v455_v6 }
 0x2f5   :  { %v460_v7 = vpop.xlane.xlu2 %459 }
 0x2f6   :  { %v467_v8 = vmul.f32 0.01, %v460_v7 }
 0x2f8   :  { %v471_v9 = vsub.f32 %v446_v0, %v467_v8 }
 0x2fa   :  { %v1886_v10 = vsel %vm305_vm2, %v471_v9, 0.0 }
 0x2fb   :  { %v479_v11 = vmul.f32 %v1886_v10, %v1886_v10 }
 0x2fd   :  { %483 = vadd.xlane.f32.xlu0 %v479_v11  ;;  %v462_v12 = vpop.xlane.xlu0 %461 }
 0x2fe   :  { %v468_v13 = vmul.f32 0.01, %v462_v12 }
 0x300   :  { %v472_v14 = vsub.f32 %v449_v2, %v468_v13  ;;  %v1408_v2 = vld [vmem:[%s2112_s5] ss:$0 sm:$0xff] }
 0x302   :  { %v1892_v15 = vsel %vm305_vm2, %v472_v14, 0.0 }
 0x303   :  { %v480_v16 = vmul.f32 %v1892_v15, %v1892_v15 }
 0x305   :  { %v464_v17 = vpop.xlane.xlu1 %463  ;;  %485 = vadd.xlane.f32.xlu1 %v480_v16 }
 0x306   :  { %v469_v18 = vmul.f32 0.01, %v464_v17 }
 0x308   :  { %v473_v19 = vsub.f32 %v452_v4, %v469_v18 }
 0x30a   :  { %v1898_v20 = vsel %vm305_vm2, %v473_v19, 0.0 }
 0x30b   :  { %v481_v21 = vmul.f32 %v1898_v20, %v1898_v20 }
 0x30d   :  { %v466_v22 = vpop.xlane.xlu2 %465  ;;  %487 = vadd.xlane.f32.xlu2 %v481_v21 }
 0x30e   :  { %v470_v23 = vmul.f32 0.01, %v466_v22 }
 0x310   :  { %v474_v24 = vsub.f32 %v455_v6, %v470_v23 }
 0x312   :  { %v1904_v25 = vsel %vm305_vm2, %v474_v24, 0.0 }
 0x313   :  { %v482_v26 = vmul.f32 %v1904_v25, %v1904_v25 }
 0x315   :  { %489 = vadd.xlane.f32.xlu0 %v482_v26 }
 0x370   :  { %v484_v46 = vpop.xlane.xlu0 %483 }
 0x371   :  { %v491_v47 = vmul.f32 0.01, %v484_v46  ;;  %v656_v46 = vld [vmem:[#allocation2 + $0x68] sm:$0xff] }
 0x373   :  { %v495_v49 = vadd.f32 1e-05, %v491_v47  ;;  %v655_v47 = vld [vmem:[#allocation2 + $0x60] sm:$0xff] }
 0x375   :  { %1432 = vrsqrt.f32 %v495_v49  ;;  %vm505_vm3 = vweird.f32 %v495_v49 }
 0x378   :  { %v486_v50 = vpop.xlane.xlu1 %485 }
 0x379   :  { %v492_v51 = vmul.f32 0.01, %v486_v50  ;;  %v654_v50 = vld [vmem:[#allocation2 + $0x58] sm:$0xff] }
 0x37b   :  { %v1433_v52 = vpop.eup %1432  ;;  %v496_v53 = vadd.f32 1e-05, %v492_v51  ;;  %v653_v51 = vld [vmem:[#allocation2 + $0x50] sm:$0xff] }
 0x37c   :  { %v500_v54 = vmul.f32 %v1433_v52, %v495_v49  ;;  %vm506_vm15 = vweird.f32 %v1433_v52 }
 0x37d   :  { %1434 = vrsqrt.f32 %v496_v53  ;;  %vm507_vm4 = vmor %vm505_vm3, %vm506_vm15  ;;  %vm515_vm6 = vweird.f32 %v496_v53 }
 0x37e   :  { %v501_v38 = vmul.f32 %v1433_v52, %v500_v54 }
 0x380   :  { %v502_v55 = vmul.f32 0.5, %v501_v38  ;;  %v488_v56 = vpop.xlane.xlu2 %487  ;;  %v650_v38 = vld [vmem:[#allocation2 + $0x38] sm:$0xff] }
 0x381   :  { %v493_v57 = vmul.f32 0.01, %v488_v56  ;;  %v649_v56 = vld [vmem:[#allocation2 + $0x30] sm:$0xff] }
 0x382   :  { %v503_v58 = vsub.f32 1.5, %v502_v55 }
 0x383   :  { %v1435_v59 = vpop.eup %1434  ;;  %v497_v60 = vadd.f32 1e-05, %v493_v57  ;;  %v648_v57 = vld [vmem:[#allocation2 + $0x28] sm:$0xff] }
 0x384   :  { %v504_v61 = vmul.f32 %v1433_v52, %v503_v58  ;;  %v510_v62 = vmul.f32 %v1435_v59, %v496_v53  ;;  %vm516_vm5 = vweird.f32 %v1435_v59  ;;  %v651_v53 = vld [vmem:[#allocation2 + $0x40] sm:$0xff] }
 0x385   :  { %1436 = vrsqrt.f32 %v497_v60  ;;  %vm517_vm7 = vmor %vm515_vm6, %vm516_vm5  ;;  %vm525_vm9 = vweird.f32 %v497_v60  ;;  %vm685_vm5 = vcmask 1043456  }
 0x386   :  { %v508_v63 = vsel %vm507_vm4, %v1433_v52, %v504_v61  ;;  %v511_v0 = vmul.f32 %v1435_v59, %v510_v62  ;;  %v652_v52 = vld [vmem:[#allocation2 + $0x48] sm:$0xff]  ;;  %v1409_v61 = vld [vmem:[%s2113_s13] ss:$0 sm:$0xff]  ;;  %v646_v62 = vld [vmem:[#allocation2 + $0x18] sm:$0xff]  ;;  %vm619_vm4 = vcmask 261120  }
 0x387   :  { %v539_v1 = vmul.f32 %v508_v63, %v1886_v10 }
 0x388   :  { %v512_v3 = vmul.f32 0.5, %v511_v0  ;;  %v490_v4 = vpop.xlane.xlu0 %489  ;;  %v645_v0 = vld [vmem:[#allocation2 + $0x10] sm:$0xff] }
 0x389   :  { %v494_v5 = vmul.f32 0.01, %v490_v4  ;;  %v546_v6 = vmul.f32 %v1407_v43, %v539_v1 }
 0x38a   :  { %v513_v7 = vsub.f32 1.5, %v512_v3 }
 0x38b   :  { %v1437_v48 = vpop.eup %1436  ;;  %v498_v8 = vadd.f32 1e-05, %v494_v5  ;;  %v553_v9 = vadd.f32 %v1408_v2, %v546_v6  ;;  %v1606_v5 = vmov 0.0  }
 0x38c   :  { %v514_v11 = vmul.f32 %v1435_v59, %v513_v7  ;;  %v520_v12 = vmul.f32 %v1437_v48, %v497_v60  ;;  %vm526_vm8 = vweird.f32 %v1437_v48  ;;  %v647_v60 = vld [vmem:[#allocation2 + $0x20] sm:$0xff] }
 0x38d   :  { %1438 = vrsqrt.f32 %v498_v8  ;;  %v557_v13 = vmax.f32 %v553_v9, 0.0  ;;  %vm527_vm10 = vmor %vm525_vm9, %vm526_vm8  ;;  %vm535_vm12 = vweird.f32 %v498_v8  ;;  %v643_v7 = vld [vmem:[#allocation2] sm:$0xff] }
 0x38e   :  { %v521_v14 = vmul.f32 %v1437_v48, %v520_v12  ;;  %v518_v16 = vsel %vm517_vm7, %v1435_v59, %v514_v11 }
 0x38f   :  { %597 = vmatmul.f32.vlgmr.msrb.gmra.mxu3 %v557_v13  ;;  %v540_v10 = vmul.f32 %v518_v16, %v1892_v15  ;;  %v733_v13 = vld [vmem:[#allocation5 + $0x78] sm:$0xff] }
 0x390   :  { %v522_v17 = vmul.f32 0.5, %v521_v14  ;;  %738 = vmatpush.msra.mxu2 %v733_v13  ;;  %v794_v13 = vld [vmem:[%s2120_s3 + $0x10] sm:$0xff] }
 0x391   :  { %v547_v18 = vmul.f32 %v1407_v43, %v540_v10 }
 0x392   :  { %v523_v19 = vsub.f32 1.5, %v522_v17 }
 0x393   :  { %v1439_v21 = vpop.eup %1438  ;;  %v554_v22 = vadd.f32 %v1408_v2, %v547_v18 }
 0x394   :  { %v524_v23 = vmul.f32 %v1437_v48, %v523_v19  ;;  %v530_v24 = vmul.f32 %v1439_v21, %v498_v8  ;;  %vm536_vm11 = vweird.f32 %v1439_v21  ;;  %v1410_v8 = vld [vmem:[%s2116_s17] ss:$0 sm:$0xff] }
 0x395   :  { %v558_v26 = vmax.f32 %v554_v22, 0.0  ;;  %vm537_vm13 = vmor %vm535_vm12, %vm536_vm11  ;;  %v731_v22 = vld [vmem:[#allocation5 + $0x68] sm:$0xff]  ;;  %vm839_vm12 = vcmask 1044480  }
 0x396   :  { %v531_v29 = vmul.f32 %v1439_v21, %v530_v24  ;;  %v528_v30 = vsel %vm527_vm10, %v1437_v48, %v524_v23  ;;  %v730_v23 = vld [vmem:[#allocation5 + $0x60] sm:$0xff]  ;;  %v729_v24 = vld [vmem:[#allocation5 + $0x58] sm:$0xff] }
 0x397   :  { %600 = vmatmul.f32.gmra.mxu3 %v558_v26  ;;  %v541_v31 = vmul.f32 %v528_v30, %v1898_v20  ;;  %v657_v20 = vld [vmem:[#allocation2 + $0x70] sm:$0xff]  ;;  %v726_v30 = vld [vmem:[#allocation5 + $0x40] sm:$0xff] }
 0x398   :  { %v532_v32 = vmul.f32 0.5, %v531_v29  ;;  %664 = vmatpush.msra.mxu1 %v657_v20  ;;  %v728_v26 = vld [vmem:[#allocation5 + $0x50] sm:$0xff]  ;;  %v727_v29 = vld [vmem:[#allocation5 + $0x48] sm:$0xff] }
 0x399   :  { %v548_v34 = vmul.f32 %v1407_v43, %v541_v31  ;;  %v725_v31 = vld [vmem:[#allocation5 + $0x38] sm:$0xff] }
 0x39a   :  { %v533_v35 = vsub.f32 1.5, %v532_v32  ;;  %665 = vmatpush.msra.mxu1 %v656_v46  ;;  %v724_v32 = vld [vmem:[#allocation5 + $0x30] sm:$0xff] }
 0x39b   :  { %v555_v15 = vadd.f32 %v1408_v2, %v548_v34  ;;  %v723_v34 = vld [vmem:[#allocation5 + $0x28] sm:$0xff] }
 0x39c   :  { %v534_v36 = vmul.f32 %v1439_v21, %v533_v35  ;;  %666 = vmatpush.msra.mxu1 %v655_v47  ;;  %v722_v35 = vld [vmem:[#allocation5 + $0x20] sm:$0xff] }
 0x39d   :  { %v559_v37 = vmax.f32 %v555_v15, 0.0  ;;  %v721_v15 = vld [vmem:[#allocation5 + $0x18] sm:$0xff] }
 0x39e   :  { %v538_v39 = vsel %vm537_vm13, %v1439_v21, %v534_v36  ;;  %667 = vmatpush.msra.mxu1 %v654_v50  ;;  %v732_v21 = vld [vmem:[#allocation5 + $0x70] sm:$0xff]  ;;  %vm835_vm13 = vcmask 39936  }
 0x39f   :  { %603 = vmatmul.f32.gmra.mxu3 %v559_v37  ;;  %v542_v33 = vmul.f32 %v538_v39, %v1904_v25  ;;  %v1930_v25 = vshrl.u32 %v303_v27, 7  ;;  %739 = vmatpush.msra.mxu2 %v732_v21  ;;  %v720_v36 = vld [vmem:[#allocation5 + $0x10] sm:$0xff]  ;;  %v719_v37 = vld [vmem:[#allocation5 + $0x8] sm:$0xff]  ;;  %v718_v39 = vld [vmem:[#allocation5] sm:$0xff] }
 0x3a0   :  { %668 = vmatpush.msra.mxu1 %v653_v51 }
 0x3a1   :  { %v549_v40 = vmul.f32 %v1407_v43, %v542_v33  ;;  %v614_v55 = vadd.s32 1, %v1930_v25  ;;  %v612_v58 = vmul.u32 8, %v1930_v25  ;;  %740 = vmatpush.msra.mxu2 %v731_v22 }
 0x3a2   :  { %669 = vmatpush.msra.mxu1 %v652_v52  ;;  %v1412_v52 = vld [vmem:[%s2118_s25] ss:$0 sm:$0xff] }
 0x3a3   :  { %v556_v41 = vadd.f32 %v1408_v2, %v549_v40  ;;  %v615_v59 = vmul.u32 8, %v614_v55  ;;  %vm1936_vm14 = vcmp.ge.s32.totalorder %v1833_v28, %v612_v58  ;;  %v644_v2 = vld [vmem:[#allocation2 + $0x8] sm:$0xff]  ;;  %741 = vmatpush.msra.mxu2 %v730_v23  ;;  %v1413_v55 = vld [vmem:[%s2119_s29] ss:$0 sm:$0xff] }
 0x3a4   :  { %670 = vmatpush.msra.mxu1 %v651_v53 }
 0x3a5   :  { %v560_v42 = vmax.f32 %v556_v41, 0.0  ;;  %vm616_vm15 = vcmp.lt.s32.totalorder %v1833_v28, %v615_v59  ;;  %742 = vmatpush.msra.mxu2 %v729_v24  ;;  %v807_v59 = vld [vmem:[%s2120_s3 + $0x78] sm:$0xff] }
 0x3a6   :  { %671 = vmatpush.msra.mxu1 %v650_v38  ;;  %vm617_vm3 = vmand %vm1936_vm14, %vm616_vm15  ;;  %812 = vmatpush.msra.mxu3 %v807_v59  ;;  %vm832_vm14 = vcmask 35840  }
 0x3a7   :  { %606 = vmatmul.f32.gmra.mxu3 %v560_v42  ;;  %v618_v6 = vsel %vm617_vm3, 0.125, %v1606_v5  ;;  %743 = vmatpush.msra.mxu2 %v728_v26 }
 0x3a8   :  { %672 = vmatpush.msra.mxu1 %v649_v56 }
 0x3a9   :  { %744 = vmatpush.msra.mxu2 %v727_v29  ;;  %v1414_v29 = vld [vmem:[%s2121_s8] ss:$0 sm:$0xff] }
 0x3aa   :  { %673 = vmatpush.msra.mxu1 %v648_v57 }
 0x3ab   :  { %745 = vmatpush.msra.mxu2 %v726_v30 }
 0x3ac   :  { %674 = vmatpush.msra.mxu1 %v647_v60 }
 0x3ad   :  { %746 = vmatpush.msra.mxu2 %v725_v31 }
 0x3ae   :  { %675 = vmatpush.msra.mxu1 %v646_v62 }
 0x3af   :  { %747 = vmatpush.msra.mxu2 %v724_v32  ;;  %v1415_v32 = vld [vmem:[%s2122_s14] ss:$0 sm:$0xff] }
 0x3b0   :  { %676 = vmatpush.msra.mxu1 %v645_v0  ;;  %v806_v0 = vld [vmem:[%s2120_s3 + $0x70] sm:$0xff] }
 0x3b1   :  { %748 = vmatpush.msra.mxu2 %v723_v34  ;;  %813 = vmatpush.msra.mxu3 %v806_v0 }
 0x3b2   :  { %677 = vmatpush.msra.mxu1 %v644_v2  ;;  %v804_v2 = vld [vmem:[%s2120_s3 + $0x60] sm:$0xff] }
 0x3b3   :  { %749 = vmatpush.msra.mxu2 %v722_v35 }
 0x3b4   :  { %678 = vmatpush.msra.mxu1 %v643_v7  ;;  %v800_v7 = vld [vmem:[%s2120_s3 + $0x40] sm:$0xff] }
 0x3b5   :  { %750 = vmatpush.msra.mxu2 %v721_v15 }
 0x3b7   :  { %751 = vmatpush.msra.mxu2 %v720_v36  ;;  %v834_v36 = vld [vmem:[%s2123_s24] sm:$0x1f] }
 0x3b9   :  { %752 = vmatpush.msra.mxu2 %v719_v37  ;;  %v1416_v37 = vld [vmem:[%s2124_s6] ss:$0 sm:$0xff] }
 0x3bb   :  { %753 = vmatpush.msra.mxu2 %v718_v39 }
 0x412   :  { %v598_v44 = vpop.f32.mrf.mxu3 }
 0x413   :  { %v599_v4 = vadd.f32 %v1409_v61, %v598_v44 }
 0x41a   :  { %v601_v49 = vpop.f32.mrf.mxu3 }
 0x41b   :  { %v602_v3 = vadd.f32 %v1409_v61, %v601_v49  ;;  %v1411_v49 = vld [vmem:[%s2117_s21] ss:$0 sm:$0xff] }
 0x422   :  { %v604_v54 = vpop.f32.mrf.mxu3 }
 0x423   :  { %v605_v1 = vadd.f32 %v1409_v61, %v604_v54 }
 0x42a   :  { %v607_v27 = vpop.f32.mrf.mxu3 }
 0x42b   :  { %v608_v43 = vadd.f32 %v1409_v61, %v607_v27 }
 0x42d   :  { %635 = vmatpush.msra.mxu0 %v608_v43 }
 0x42f   :  { %636 = vmatpush.msra.mxu0 %v605_v1  ;;  %v805_v1 = vld [vmem:[%s2120_s3 + $0x68] sm:$0xff] }
 0x430   :  { %814 = vmatpush.msra.mxu3 %v805_v1 }
 0x431   :  { %637 = vmatpush.msra.mxu0 %v602_v3  ;;  %v803_v3 = vld [vmem:[%s2120_s3 + $0x58] sm:$0xff] }
 0x432   :  { %815 = vmatpush.msra.mxu3 %v804_v2 }
 0x433   :  { %638 = vmatpush.msra.mxu0 %v599_v4  ;;  %v802_v4 = vld [vmem:[%s2120_s3 + $0x50] sm:$0xff] }
 0x434   :  { %1348 = vmatmul.msk.f32.vlgmr.msra.gmra.mxu0 %vm619_vm4, %v618_v6  ;;  %816 = vmatpush.msra.mxu3 %v803_v3  ;;  %v801_v6 = vld [vmem:[%s2120_s3 + $0x48] sm:$0xff]  ;;  %vm918_vm4 = vcmask 31744  }
 0x435   :  { %1349 = vmatpush.msk.msrb.mxu0 %vm839_vm12, %v834_v36  ;;  %v1084_v36 = vld [vmem:[#allocation7 + $0x48] sm:$0xff] }
 0x436   :  { %817 = vmatpush.msra.mxu3 %v802_v4 }
 0x438   :  { %818 = vmatpush.msra.mxu3 %v801_v6 }
 0x43a   :  { %819 = vmatpush.msra.mxu3 %v800_v7  ;;  %v1090_v7 = vld [vmem:[#allocation7 + $0x78] sm:$0xff] }
 0x4b1   :  { %v640_v48 = vpop.f32.mrf.mxu0 }
 0x4b2   :  { %679 = vmatmul.f32.vlgmr.msra.gmra.mxu1 %v640_v48  ;;  %v799_v48 = vld [vmem:[%s2120_s3 + $0x38] sm:$0xff] }
 0x4b3   :  { %820 = vmatpush.msra.mxu3 %v799_v48 }
 0x52f   :  { %v680_v9 = vpop.f32.mrf.mxu1 }
 0x530   :  { %v681_v11 = vadd.f32 %v1410_v8, %v680_v9  ;;  %v798_v8 = vld [vmem:[%s2120_s3 + $0x30] sm:$0xff]  ;;  %v797_v9 = vld [vmem:[%s2120_s3 + $0x28] sm:$0xff] }
 0x531   :  { %821 = vmatpush.msra.mxu3 %v798_v8 }
 0x532   :  { %v686_v12 = vsel %vm685_vm5, %v681_v11, 0.0 }
 0x533   :  { %687 = vadd.xlane.f32.xlu1 %v686_v12  ;;  %822 = vmatpush.msra.mxu3 %v797_v9  ;;  %v795_v12 = vld [vmem:[%s2120_s3 + $0x18] sm:$0xff] }
 0x5a6   :  { %v688_v14 = vpop.xlane.xlu1 %687 }
 0x5a7   :  { %v689_v16 = vmul.f32 0.01, %v688_v14  ;;  %v793_v14 = vld [vmem:[%s2120_s3 + $0x8] sm:$0xff] }
 0x5a9   :  { %v690_v10 = vsub.f32 %v681_v11, %v689_v16  ;;  %v796_v11 = vld [vmem:[%s2120_s3 + $0x20] sm:$0xff] }
 0x5aa   :  { %823 = vmatpush.msra.mxu3 %v796_v11  ;;  %v792_v16 = vld [vmem:[%s2120_s3] sm:$0xff] }
 0x5ab   :  { %v691_v17 = vsel %vm305_vm2, %v690_v10, 0.0 }
 0x5ac   :  { %v692_v18 = vmul.f32 %v691_v17, %v691_v17  ;;  %824 = vmatpush.msra.mxu3 %v795_v12 }
 0x5ae   :  { %v693_v19 = vsel %vm685_vm5, %v692_v18, 0.0  ;;  %825 = vmatpush.msra.mxu3 %v794_v13 }
 0x5af   :  { %694 = vadd.xlane.f32.xlu2 %v693_v19 }
 0x5b0   :  { %826 = vmatpush.msra.mxu3 %v793_v14 }
 0x5b2   :  { %827 = vmatpush.msra.mxu3 %v792_v16 }
 0x622   :  { %v695_v33 = vpop.xlane.xlu2 %694 }
 0x623   :  { %v696_v40 = vmul.f32 0.01, %v695_v33 }
 0x625   :  { %v697_v41 = vadd.f32 1e-05, %v696_v40  ;;  %v885_v40 = vld [vmem:[%s2125_s27] sm:$0x7] }
 0x626   :  { %1351 = vmatpush.msk.msrb.mxu1 %vm216_vm0, %v885_v40  ;;  %v1080_v40 = vld [vmem:[#allocation7 + $0x28] sm:$0xff] }
 0x627   :  { %1440 = vrsqrt.f32 %v697_v41  ;;  %vm704_vm7 = vweird.f32 %v697_v41 }
 0x628   :  { %1095 = vmatpush.msra.mxu1 %v1090_v7 }
 0x62d   :  { %v1441_v42 = vpop.eup %1440 }
 0x62e   :  { %v699_v44 = vmul.f32 %v1441_v42, %v697_v41  ;;  %vm705_vm6 = vweird.f32 %v1441_v42  ;;  %v1460_v41 = vld [vmem:[%s1621_s9] sm:$0xff] }
 0x62f   :  { %vm706_vm8 = vmor %vm704_vm7, %vm705_vm6  ;;  %1352 = vmatmul.msk.f32.vlgmr.msrb.gmra.mxu1 %vm203_vm1, %v1460_v41  ;;  %v1079_v41 = vld [vmem:[#allocation7 + $0x20] sm:$0xff] }
 0x630   :  { %v700_v45 = vmul.f32 %v1441_v42, %v699_v44  ;;  %v871_v44 = vadd.s32 1, %v1833_v28 }
 0x632   :  { %v701_v20 = vmul.f32 0.5, %v700_v45  ;;  %v1462_v45 = vld [vmem:[%s1621_s9 + $0x10] sm:$0xff] }
 0x634   :  { %v702_v46 = vsub.f32 1.5, %v701_v20  ;;  %v866_v20 = vmul.u32 8, %v1833_v28  ;;  %v1238_v28 = vld [vmem:[%s1776_s19 + $0x50] sm:$0xff] }
 0x636   :  { %v703_v47 = vmul.f32 %v1441_v42, %v702_v46  ;;  %v872_v46 = vmul.u32 8, %v871_v44  ;;  %vm867_vm15 = vcmp.ge.s32.totalorder %v1930_v25, %v866_v20  ;;  %v1077_v44 = vld [vmem:[#allocation7 + $0x10] sm:$0xff] }
 0x638   :  { %v707_v50 = vsel %vm706_vm8, %v1441_v42, %v703_v47  ;;  %v1461_v42 = vld [vmem:[%s1621_s9 + $0x8] sm:$0xff]  ;;  %vm873_vm3 = vcmp.lt.s32.totalorder %v1930_v25, %v872_v46  ;;  %v1463_v47 = vld [vmem:[%s1621_s9 + $0x18] sm:$0xff]  ;;  %s2127_s9 = sld [smem:[#allocation25_spill]] }
 0x639   :  { %v708_v51 = vmul.f32 %v707_v50, %v691_v17  ;;  %1353 = vmatmul.msk.f32.gmra.mxu1 %vm203_vm1, %v1461_v42  ;;  %vm877_vm0 = vmand %vm867_vm15, %vm873_vm3  ;;  %v1078_v42 = vld [vmem:[#allocation7 + $0x18] sm:$0xff] }
 0x63a   :  { %v881_v50 = vsel %vm877_vm0, 1.0, %v1606_v5 }
 0x63b   :  { %v712_v53 = vmul.f32 %v1411_v49, %v708_v51  ;;  %v863_v49 = vadd.s32 8, %v1930_v25 }
 0x63d   :  { %v716_v54 = vadd.f32 %v1412_v52, %v712_v53  ;;  %vm868_vm6 = vcmp.ge.s32.totalorder %v863_v49, %v866_v20  ;;  %vm874_vm7 = vcmp.lt.s32.totalorder %v863_v49, %v872_v46  ;;  %v864_v52 = vadd.s32 16, %v1930_v25 }
 0x63e   :  { %vm878_vm8 = vmand %vm868_vm6, %vm874_vm7 }
 0x63f   :  { %v717_v38 = vmax.f32 %v716_v54, 0.0  ;;  %v882_v53 = vsel %vm878_vm8, 1.0, %v1606_v5  ;;  %v865_v54 = vadd.s32 24, %v1930_v25 }
 0x641   :  { %754 = vmatmul.f32.vlgmr.msra.gmra.mxu2 %v717_v38  ;;  %1354 = vmatmul.msk.f32.gmra.mxu1 %vm203_vm1, %v1462_v45  ;;  %vm876_vm12 = vcmp.lt.s32.totalorder %v865_v54, %v872_v46  ;;  %v1076_v45 = vld [vmem:[#allocation7 + $0x8] sm:$0xff] }
 0x649   :  { %1355 = vmatmul.msk.f32.gmra.mxu1 %vm203_vm1, %v1463_v47 }
 0x6c4   :  { %v755_v56 = vpop.f32.mrf.mxu2 }
 0x6c5   :  { %v756_v57 = vadd.f32 %v1413_v55, %v755_v56  ;;  %v906_v56 = vpop.f32.mrf.mxu1 }
 0x6c7   :  { %v760_v58 = vsel %vm685_vm5, %v756_v57, 0.0 }
 0x6c8   :  { %761 = vadd.xlane.f32.xlu0 %v760_v58 }
 0x73b   :  { %v762_v60 = vpop.xlane.xlu0 %761 }
 0x73c   :  { %v763_v61 = vmul.f32 0.01, %v762_v60  ;;  %v909_v60 = vpop.f32.mrf.mxu1 }
 0x73e   :  { %v764_v27 = vsub.f32 %v756_v57, %v763_v61  ;;  %v1417_v57 = vld [vmem:[%s2126_s28] ss:$0 sm:$0xff] }
 0x740   :  { %v765_v62 = vsel %vm305_vm2, %v764_v27, 0.0 }
 0x741   :  { %v766_v43 = vmul.f32 %v765_v62, %v765_v62 }
 0x743   :  { %v767_v63 = vsel %vm685_vm5, %v766_v43, 0.0 }
 0x744   :  { %768 = vadd.xlane.f32.xlu1 %v767_v63  ;;  %v912_v43 = vpop.f32.mrf.mxu1 }
 0x74c   :  { %v915_v2 = vpop.f32.mrf.mxu1 }
 0x7b7   :  { %v769_v10 = vpop.xlane.xlu1 %768 }
 0x7b8   :  { %v770_v17 = vmul.f32 0.01, %v769_v10 }
 0x7ba   :  { %v771_v18 = vadd.f32 1e-05, %v770_v17 }
 0x7bc   :  { %1442 = vrsqrt.f32 %v771_v18  ;;  %vm778_vm10 = vweird.f32 %v771_v18 }
 0x7c2   :  { %v1443_v19 = vpop.eup %1442 }
 0x7c3   :  { %v773_v21 = vmul.f32 %v1443_v19, %v771_v18  ;;  %vm779_vm9 = vweird.f32 %v1443_v19 }
 0x7c4   :  { %vm780_vm11 = vmor %vm778_vm10, %vm779_vm9  ;;  %vm869_vm9 = vcmp.ge.s32.totalorder %v864_v52, %v866_v20  ;;  %vm875_vm10 = vcmp.lt.s32.totalorder %v864_v52, %v872_v46 }
 0x7c5   :  { %v774_v22 = vmul.f32 %v1443_v19, %v773_v21 }
 0x7c7   :  { %v775_v23 = vmul.f32 0.5, %v774_v22 }
 0x7c9   :  { %v776_v24 = vsub.f32 1.5, %v775_v23 }
 0x7cb   :  { %v777_v26 = vmul.f32 %v1443_v19, %v776_v24 }
 0x7cd   :  { %v781_v30 = vsel %vm780_vm11, %v1443_v19, %v777_v26  ;;  %vm879_vm11 = vmand %vm869_vm9, %vm875_vm10 }
 0x7ce   :  { %v782_v31 = vmul.f32 %v781_v30, %v765_v62  ;;  %v883_v38 = vsel %vm879_vm11, 1.0, %v1606_v5 }
 0x7d0   :  { %v786_v34 = vmul.f32 %v1414_v29, %v782_v31  ;;  %v1089_v31 = vld [vmem:[#allocation7 + $0x70] sm:$0xff] }
 0x7d1   :  { %1096 = vmatpush.msra.mxu1 %v1089_v31 }
 0x7d2   :  { %v790_v35 = vadd.f32 %v1415_v32, %v786_v34  ;;  %v1088_v32 = vld [vmem:[#allocation7 + $0x68] sm:$0xff]  ;;  %v1087_v34 = vld [vmem:[#allocation7 + $0x60] sm:$0xff] }
 0x7d3   :  { %1097 = vmatpush.msra.mxu1 %v1088_v32 }
 0x7d4   :  { %v791_v15 = vmax.f32 %v790_v35, 0.0  ;;  %v1086_v35 = vld [vmem:[#allocation7 + $0x58] sm:$0xff] }
 0x7d5   :  { %1098 = vmatpush.msra.mxu1 %v1087_v34 }
 0x7d6   :  { %828 = vmatmul.f32.vlgmr.msra.gmra.mxu3 %v791_v15  ;;  %v1085_v15 = vld [vmem:[#allocation7 + $0x50] sm:$0xff] }
 0x7d7   :  { %1099 = vmatpush.msra.mxu1 %v1086_v35 }
 0x7d9   :  { %1100 = vmatpush.msra.mxu1 %v1085_v15 }
 0x7db   :  { %1101 = vmatpush.msra.mxu1 %v1084_v36 }
 0x859   :  { %v829_v39 = vpop.f32.mrf.mxu3 }
 0x85a   :  { %v830_v33 = vadd.f32 %v1416_v37, %v829_v39  ;;  %v1083_v37 = vld [vmem:[#allocation7 + $0x40] sm:$0xff]  ;;  %v1082_v39 = vld [vmem:[#allocation7 + $0x38] sm:$0xff] }
 0x85b   :  { %1102 = vmatpush.msra.mxu1 %v1083_v37 }
 0x85c   :  { %1350 = vmatmul.msk.f32.vlgmr.msrb.gmra.mxu0 %vm835_vm13, %v830_v33  ;;  %833 = vst.msk [vmem:[#allocation8] sm:$0xf] %vm832_vm14, %v830_v33  ;;  %v1081_v33 = vld [vmem:[#allocation7 + $0x30] sm:$0xff] }
 0x85d   :  { %1103 = vmatpush.msra.mxu1 %v1082_v39 }
 0x85f   :  { %1104 = vmatpush.msra.mxu1 %v1081_v33 }
 0x861   :  { %1105 = vmatpush.msra.mxu1 %v1080_v40 }
 0x863   :  { %1106 = vmatpush.msra.mxu1 %v1079_v41 }
 0x865   :  { %1107 = vmatpush.msra.mxu1 %v1078_v42 }
 0x867   :  { %1108 = vmatpush.msra.mxu1 %v1077_v44 }
 0x869   :  { %1109 = vmatpush.msra.mxu1 %v1076_v45 }
 0x8d9   :  { %v860_v51 = vpop.f32.mrf.mxu0 }
 0x8da   :  { %1356 = vmatpush.msk.msra.mxu0 %vm685_vm5, %v860_v51  ;;  %vm870_vm5 = vcmp.ge.s32.totalorder %v865_v54, %v866_v20  ;;  %v1075_v20 = vld [vmem:[#allocation7] sm:$0xff] }
 0x8db   :  { %1357 = vmatmul.msk.f32.vlgmr.msra.gmra.mxu0 %vm918_vm4, %v881_v50  ;;  %vm880_vm13 = vmand %vm870_vm5, %vm876_vm12  ;;  %1110 = vmatpush.msra.mxu1 %v1075_v20 }
 0x8dc   :  { %v884_v55 = vsel %vm880_vm13, 1.0, %v1606_v5 }
 0x8e3   :  { %1358 = vmatmul.msk.f32.gmra.mxu0 %vm918_vm4, %v882_v53 }
 0x8eb   :  { %1359 = vmatmul.msk.f32.gmra.mxu0 %vm918_vm4, %v883_v38 }
 0x8f3   :  { %1360 = vmatmul.msk.f32.gmra.mxu0 %vm918_vm4, %v884_v55 }
 0x958   :  { %v951_v58 = vpop.f32.mrf.mxu0 }
 0x959   :  { %v952_v59 = vadd.f32 %v951_v58, %v906_v56 }
 0x95b   :  { %v967_v61 = vadd.f32 %v1417_v57, %v952_v59 }
 0x95d   :  { %973 = vadd.xlane.f32.xlu2 %v967_v61 }
 0x960   :  { %v954_v27 = vpop.f32.mrf.mxu0 }
 0x961   :  { %v955_v25 = vadd.f32 %v954_v27, %v909_v60 }
 0x963   :  { %v968_v62 = vadd.f32 %v1417_v57, %v955_v25  ;;  %v1418_v25 = vld [vmem:[%s2127_s9] ss:$0 sm:$0xff] }
 0x965   :  { %975 = vadd.xlane.f32.xlu0 %v968_v62 }
 0x968   :  { %v957_v63 = vpop.f32.mrf.mxu0 }
 0x969   :  { %v958_v0 = vadd.f32 %v957_v63, %v912_v43 }
 0x96b   :  { %v969_v1 = vadd.f32 %v1417_v57, %v958_v0  ;;  %v1419_v0 = vld [vmem:[%s2128_s0] ss:$0 sm:$0xff] }
 0x96d   :  { %977 = vadd.xlane.f32.xlu1 %v969_v1 }
 0x970   :  { %v960_v5 = vpop.f32.mrf.mxu0 }
 0x971   :  { %v961_v3 = vadd.f32 %v960_v5, %v915_v2 }
 0x973   :  { %v970_v4 = vadd.f32 %v1417_v57, %v961_v3 }
 0x975   :  { %979 = vadd.xlane.f32.xlu2 %v970_v4 }
 0x9d0   :  { %v974_v6 = vpop.xlane.xlu2 %973 }
 0x9d1   :  { %v981_v48 = vmul.f32 0.01, %v974_v6 }
 0x9d3   :  { %v985_v8 = vsub.f32 %v967_v61, %v981_v48 }
 0x9d5   :  { %v2005_v9 = vsel %vm305_vm2, %v985_v8, 0.0 }
 0x9d6   :  { %v993_v11 = vmul.f32 %v2005_v9, %v2005_v9 }
 0x9d8   :  { %v976_v12 = vpop.xlane.xlu0 %975  ;;  %997 = vadd.xlane.f32.xlu0 %v993_v11 }
 0x9d9   :  { %v982_v13 = vmul.f32 0.01, %v976_v12 }
 0x9db   :  { %v986_v14 = vsub.f32 %v968_v62, %v982_v13 }
 0x9dd   :  { %v2011_v16 = vsel %vm305_vm2, %v986_v14, 0.0 }
 0x9de   :  { %v994_v10 = vmul.f32 %v2011_v16, %v2011_v16 }
 0x9e0   :  { %v978_v17 = vpop.xlane.xlu1 %977  ;;  %999 = vadd.xlane.f32.xlu1 %v994_v10 }
 0x9e1   :  { %v983_v18 = vmul.f32 0.01, %v978_v17 }
 0x9e3   :  { %v987_v19 = vsub.f32 %v969_v1, %v983_v18 }
 0x9e5   :  { %v2017_v21 = vsel %vm305_vm2, %v987_v19, 0.0 }
 0x9e6   :  { %v995_v22 = vmul.f32 %v2017_v21, %v2017_v21 }
 0x9e8   :  { %1001 = vadd.xlane.f32.xlu2 %v995_v22  ;;  %v980_v23 = vpop.xlane.xlu2 %979 }
 0x9e9   :  { %v984_v24 = vmul.f32 0.01, %v980_v23 }
 0x9eb   :  { %v988_v26 = vsub.f32 %v970_v4, %v984_v24 }
 0x9ed   :  { %v2023_v29 = vsel %vm305_vm2, %v988_v26, 0.0 }
 0x9ee   :  { %v996_v30 = vmul.f32 %v2023_v29, %v2023_v29 }
 0x9f0   :  { %1003 = vadd.xlane.f32.xlu0 %v996_v30 }
 0xa4b   :  { %v998_v46 = vpop.xlane.xlu0 %997 }
 0xa4c   :  { %v1005_v47 = vmul.f32 0.01, %v998_v46 }
 0xa4e   :  { %v1009_v49 = vadd.f32 1e-05, %v1005_v47 }
 0xa50   :  { %1444 = vrsqrt.f32 %v1009_v49  ;;  %vm1019_vm15 = vweird.f32 %v1009_v49 }
 0xa53   :  { %v1000_v50 = vpop.xlane.xlu1 %999 }
 0xa54   :  { %v1006_v51 = vmul.f32 0.01, %v1000_v50 }
 0xa56   :  { %v1445_v52 = vpop.eup %1444  ;;  %v1010_v53 = vadd.f32 1e-05, %v1006_v51 }
 0xa57   :  { %v1014_v54 = vmul.f32 %v1445_v52, %v1009_v49  ;;  %vm1020_vm14 = vweird.f32 %v1445_v52 }
 0xa58   :  { %1446 = vrsqrt.f32 %v1010_v53  ;;  %vm1021_vm3 = vmor %vm1019_vm15, %vm1020_vm14  ;;  %vm1029_vm4 = vweird.f32 %v1010_v53 }
 0xa59   :  { %v1015_v38 = vmul.f32 %v1445_v52, %v1014_v54 }
 0xa5b   :  { %v1016_v55 = vmul.f32 0.5, %v1015_v38  ;;  %v1002_v56 = vpop.xlane.xlu2 %1001 }
 0xa5c   :  { %v1007_v57 = vmul.f32 0.01, %v1002_v56 }
 0xa5d   :  { %v1017_v58 = vsub.f32 1.5, %v1016_v55 }
 0xa5e   :  { %v1447_v59 = vpop.eup %1446  ;;  %v1011_v60 = vadd.f32 1e-05, %v1007_v57 }
 0xa5f   :  { %v1018_v61 = vmul.f32 %v1445_v52, %v1017_v58  ;;  %v1024_v27 = vmul.f32 %v1447_v59, %v1010_v53  ;;  %vm1030_vm0 = vweird.f32 %v1447_v59 }
 0xa60   :  { %1448 = vrsqrt.f32 %v1011_v60  ;;  %vm1031_vm6 = vmor %vm1029_vm4, %vm1030_vm0  ;;  %vm1039_vm8 = vweird.f32 %v1011_v60 }
 0xa61   :  { %v1022_v62 = vsel %vm1021_vm3, %v1445_v52, %v1018_v61  ;;  %v1025_v43 = vmul.f32 %v1447_v59, %v1024_v27 }
 0xa62   :  { %v1053_v63 = vmul.f32 %v1022_v62, %v2005_v9 }
 0xa63   :  { %v1026_v1 = vmul.f32 0.5, %v1025_v43  ;;  %v1004_v2 = vpop.xlane.xlu0 %1003 }
 0xa64   :  { %v1008_v5 = vmul.f32 0.01, %v1004_v2  ;;  %v1060_v3 = vmul.f32 %v1418_v25, %v1053_v63 }
 0xa65   :  { %v1027_v4 = vsub.f32 1.5, %v1026_v1 }
 0xa66   :  { %v1449_v6 = vpop.eup %1448  ;;  %v1012_v7 = vadd.f32 1e-05, %v1008_v5  ;;  %v1067_v48 = vadd.f32 %v1419_v0, %v1060_v3  ;;  %v1242_v3 = vld [vmem:[%s1776_s19 + $0x70] sm:$0xff] }
 0xa67   :  { %v1028_v8 = vmul.f32 %v1447_v59, %v1027_v4  ;;  %v1034_v11 = vmul.f32 %v1449_v6, %v1011_v60  ;;  %vm1040_vm7 = vweird.f32 %v1449_v6  ;;  %v1241_v4 = vld [vmem:[%s1776_s19 + $0x68] sm:$0xff] }
 0xa68   :  { %1450 = vrsqrt.f32 %v1012_v7  ;;  %v1071_v12 = vmax.f32 %v1067_v48, 0.0  ;;  %vm1041_vm9 = vmor %vm1039_vm8, %vm1040_vm7  ;;  %vm1049_vm11 = vweird.f32 %v1012_v7  ;;  %v1237_v48 = vld [vmem:[%s1776_s19 + $0x48] sm:$0xff] }
 0xa69   :  { %v1035_v13 = vmul.f32 %v1449_v6, %v1034_v11  ;;  %v1032_v14 = vsel %vm1031_vm6, %v1447_v59, %v1028_v8  ;;  %v1236_v8 = vld [vmem:[%s1776_s19 + $0x40] sm:$0xff]  ;;  %v1235_v11 = vld [vmem:[%s1776_s19 + $0x38] sm:$0xff] }
 0xa6a   :  { %1111 = vmatmul.f32.vlgmr.msra.gmra.mxu1 %v1071_v12  ;;  %v1054_v9 = vmul.f32 %v1032_v14, %v2011_v16  ;;  %v1234_v12 = vld [vmem:[%s1776_s19 + $0x30] sm:$0xff]  ;;  %v1232_v14 = vld [vmem:[%s1776_s19 + $0x20] sm:$0xff] }
 0xa6b   :  { %v1036_v10 = vmul.f32 0.5, %v1035_v13  ;;  %v1233_v13 = vld [vmem:[%s1776_s19 + $0x28] sm:$0xff] }
 0xa6c   :  { %v1061_v17 = vmul.f32 %v1418_v25, %v1054_v9  ;;  %v1231_v9 = vld [vmem:[%s1776_s19 + $0x18] sm:$0xff] }
 0xa6d   :  { %v1037_v18 = vsub.f32 1.5, %v1036_v10  ;;  %v1230_v10 = vld [vmem:[%s1776_s19 + $0x10] sm:$0xff] }
 0xa6e   :  { %v1451_v19 = vpop.eup %1450  ;;  %v1068_v22 = vadd.f32 %v1419_v0, %v1061_v17  ;;  %v1229_v17 = vld [vmem:[%s1776_s19 + $0x8] sm:$0xff] }
 0xa6f   :  { %v1038_v23 = vmul.f32 %v1449_v6, %v1037_v18  ;;  %v1044_v24 = vmul.f32 %v1451_v19, %v1012_v7  ;;  %vm1050_vm10 = vweird.f32 %v1451_v19  ;;  %v1239_v7 = vld [vmem:[%s1776_s19 + $0x58] sm:$0xff]  ;;  %v1228_v18 = vld [vmem:[%s1776_s19] sm:$0xff] }
 0xa70   :  { %v1072_v26 = vmax.f32 %v1068_v22, 0.0  ;;  %vm1051_vm5 = vmor %vm1049_vm11, %vm1050_vm10 }
 0xa71   :  { %v1045_v30 = vmul.f32 %v1451_v19, %v1044_v24  ;;  %v1042_v31 = vsel %vm1041_vm9, %v1449_v6, %v1038_v23  ;;  %v1240_v6 = vld [vmem:[%s1776_s19 + $0x60] sm:$0xff] }
 0xa72   :  { %1114 = vmatmul.f32.gmra.mxu1 %v1072_v26  ;;  %v1055_v32 = vmul.f32 %v1042_v31, %v2017_v21  ;;  %v1420_v21 = vld [vmem:[%s2129_s10] ss:$0 sm:$0xff] }
 0xa73   :  { %v1046_v34 = vmul.f32 0.5, %v1045_v30 }
 0xa74   :  { %v1062_v35 = vmul.f32 %v1418_v25, %v1055_v32 }
 0xa75   :  { %v1047_v16 = vsub.f32 1.5, %v1046_v34 }
 0xa76   :  { %v1069_v15 = vadd.f32 %v1419_v0, %v1062_v35 }
 0xa77   :  { %v1048_v36 = vmul.f32 %v1451_v19, %v1047_v16 }
 0xa78   :  { %v1073_v37 = vmax.f32 %v1069_v15, 0.0 }
 0xa79   :  { %v1052_v39 = vsel %vm1051_vm5, %v1451_v19, %v1048_v36 }
 0xa7a   :  { %1117 = vmatmul.f32.gmra.mxu1 %v1073_v37  ;;  %v1056_v33 = vmul.f32 %v1052_v39, %v2023_v29  ;;  %v1243_v29 = vld [vmem:[%s1776_s19 + $0x78] sm:$0xff]  ;;  %s1607_s19 = smov [#allocation8]  }
 0xa7b   :  { %1248 = vmatpush.msrb.mxu0 %v1243_v29  ;;  %s1288_s16 = sshll.u32 %s1607_s19, 4  ;;  %s1289_s16 = int_to_ptr.vmem [resolvable:$true] %s1288_s16 }
 0xa7c   :  { %v1063_v40 = vmul.f32 %v1418_v25, %v1056_v33 }
 0xa7d   :  { %1249 = vmatpush.msrb.mxu0 %v1242_v3 }
 0xa7e   :  { %v1070_v41 = vadd.f32 %v1419_v0, %v1063_v40 }
 0xa7f   :  { %1250 = vmatpush.msrb.mxu0 %v1241_v4 }
 0xa80   :  { %v1074_v42 = vmax.f32 %v1070_v41, 0.0  ;;  %v1421_v41 = vld [vmem:[%s2130_s11] ss:$0 sm:$0xff] }
 0xa81   :  { %1251 = vmatpush.msrb.mxu0 %v1240_v6 }
 0xa82   :  { %1120 = vmatmul.f32.gmra.mxu1 %v1074_v42 }
 0xa83   :  { %1252 = vmatpush.msrb.mxu0 %v1239_v7 }
 0xa85   :  { %1253 = vmatpush.msrb.mxu0 %v1238_v28 }
 0xa87   :  { %1254 = vmatpush.msrb.mxu0 %v1237_v48 }
 0xa89   :  { %1255 = vmatpush.msrb.mxu0 %v1236_v8 }
 0xa8b   :  { %1256 = vmatpush.msrb.mxu0 %v1235_v11 }
 0xa8d   :  { %1257 = vmatpush.msrb.mxu0 %v1234_v12 }
 0xa8f   :  { %1258 = vmatpush.msrb.mxu0 %v1233_v13 }
 0xa91   :  { %1259 = vmatpush.msrb.mxu0 %v1232_v14 }
 0xa93   :  { %1260 = vmatpush.msrb.mxu0 %v1231_v9 }
 0xa95   :  { %1261 = vmatpush.msrb.mxu0 %v1230_v10 }
 0xa97   :  { %1262 = vmatpush.msrb.mxu0 %v1229_v17 }
 0xa99   :  { %1263 = vmatpush.msrb.mxu0 %v1228_v18 }
 0xae7   :  { %v1112_v44 = vpop.f32.mrf.mxu1 }
 0xae8   :  { %v1113_v45 = vadd.f32 %v1420_v21, %v1112_v44 }
 0xaea   :  { %1126 = vadd.xlane.f32.xlu1 %v1113_v45 }
 0xaef   :  { %v1115_v20 = vpop.f32.mrf.mxu1 }
 0xaf0   :  { %v1116_v46 = vadd.f32 %v1420_v21, %v1115_v20 }
 0xaf2   :  { %1128 = vadd.xlane.f32.xlu2 %v1116_v46 }
 0xaf7   :  { %v1118_v47 = vpop.f32.mrf.mxu1 }
 0xaf8   :  { %v1119_v49 = vadd.f32 %v1420_v21, %v1118_v47 }
 0xafa   :  { %1130 = vadd.xlane.f32.xlu0 %v1119_v49 }
 0xaff   :  { %v1121_v50 = vpop.f32.mrf.mxu1 }
 0xb00   :  { %v1122_v51 = vadd.f32 %v1420_v21, %v1121_v50 }
 0xb02   :  { %1132 = vadd.xlane.f32.xlu1 %v1122_v51 }
 0xb5d   :  { %v1127_v52 = vpop.xlane.xlu1 %1126 }
 0xb5e   :  { %v1134_v53 = vmul.f32 0.01, %v1127_v52 }
 0xb60   :  { %v1138_v54 = vsub.f32 %v1113_v45, %v1134_v53  ;;  %v1422_v45 = vld [vmem:[%s2131_s15] ss:$0 sm:$0xff] }
 0xb62   :  { %v2037_v38 = vsel %vm305_vm2, %v1138_v54, 0.0 }
 0xb63   :  { %v1146_v55 = vmul.f32 %v2037_v38, %v2037_v38 }
 0xb65   :  { %1150 = vadd.xlane.f32.xlu2 %v1146_v55  ;;  %v1129_v56 = vpop.xlane.xlu2 %1128 }
 0xb66   :  { %v1135_v57 = vmul.f32 0.01, %v1129_v56 }
 0xb68   :  { %v1139_v58 = vsub.f32 %v1116_v46, %v1135_v57 }
 0xb6a   :  { %v2043_v59 = vsel %vm305_vm2, %v1139_v58, 0.0 }
 0xb6b   :  { %v1147_v60 = vmul.f32 %v2043_v59, %v2043_v59 }
 0xb6d   :  { %v1131_v61 = vpop.xlane.xlu0 %1130  ;;  %1152 = vadd.xlane.f32.xlu0 %v1147_v60 }
 0xb6e   :  { %v1136_v27 = vmul.f32 0.01, %v1131_v61 }
 0xb70   :  { %v1140_v25 = vsub.f32 %v1119_v49, %v1136_v27 }
 0xb72   :  { %v2049_v62 = vsel %vm305_vm2, %v1140_v25, 0.0 }
 0xb73   :  { %v1148_v43 = vmul.f32 %v2049_v62, %v2049_v62 }
 0xb75   :  { %v1133_v63 = vpop.xlane.xlu1 %1132  ;;  %1154 = vadd.xlane.f32.xlu1 %v1148_v43 }
 0xb76   :  { %v1137_v0 = vmul.f32 0.01, %v1133_v63 }
 0xb78   :  { %v1141_v1 = vsub.f32 %v1122_v51, %v1137_v0 }
 0xb7a   :  { %v2055_v2 = vsel %vm305_vm2, %v1141_v1, 0.0 }
 0xb7b   :  { %v1149_v5 = vmul.f32 %v2055_v2, %v2055_v2 }
 0xb7d   :  { %1156 = vadd.xlane.f32.xlu2 %v1149_v5 }
 0xbd8   :  { %v1151_v19 = vpop.xlane.xlu2 %1150 }
 0xbd9   :  { %v1158_v22 = vmul.f32 0.01, %v1151_v19 }
 0xbdb   :  { %v1162_v23 = vadd.f32 1e-05, %v1158_v22 }
 0xbdd   :  { %1452 = vrsqrt.f32 %v1162_v23  ;;  %vm1172_vm12 = vweird.f32 %v1162_v23 }
 0xbe0   :  { %v1153_v24 = vpop.xlane.xlu0 %1152 }
 0xbe1   :  { %v1159_v26 = vmul.f32 0.01, %v1153_v24 }
 0xbe3   :  { %v1453_v30 = vpop.eup %1452  ;;  %v1163_v31 = vadd.f32 1e-05, %v1159_v26 }
 0xbe4   :  { %v1167_v32 = vmul.f32 %v1453_v30, %v1162_v23  ;;  %vm1173_vm2 = vweird.f32 %v1453_v30 }
 0xbe5   :  { %1454 = vrsqrt.f32 %v1163_v31  ;;  %vm1174_vm13 = vmor %vm1172_vm12, %vm1173_vm2  ;;  %vm1182_vm15 = vweird.f32 %v1163_v31 }
 0xbe6   :  { %v1168_v34 = vmul.f32 %v1453_v30, %v1167_v32 }
 0xbe8   :  { %v1169_v35 = vmul.f32 0.5, %v1168_v34  ;;  %v1155_v16 = vpop.xlane.xlu1 %1154 }
 0xbe9   :  { %v1160_v15 = vmul.f32 0.01, %v1155_v16 }
 0xbea   :  { %v1170_v36 = vsub.f32 1.5, %v1169_v35 }
 0xbeb   :  { %v1455_v37 = vpop.eup %1454  ;;  %v1164_v39 = vadd.f32 1e-05, %v1160_v15 }
 0xbec   :  { %v1171_v33 = vmul.f32 %v1453_v30, %v1170_v36  ;;  %v1177_v40 = vmul.f32 %v1455_v37, %v1163_v31  ;;  %vm1183_vm14 = vweird.f32 %v1455_v37 }
 0xbed   :  { %1456 = vrsqrt.f32 %v1164_v39  ;;  %vm1184_vm3 = vmor %vm1182_vm15, %vm1183_vm14  ;;  %vm1192_vm4 = vweird.f32 %v1164_v39 }
 0xbee   :  { %v1175_v42 = vsel %vm1174_vm13, %v1453_v30, %v1171_v33  ;;  %v1178_v21 = vmul.f32 %v1455_v37, %v1177_v40 }
 0xbef   :  { %v1206_v44 = vmul.f32 %v1175_v42, %v2037_v38 }
 0xbf0   :  { %v1179_v20 = vmul.f32 0.5, %v1178_v21  ;;  %v1157_v46 = vpop.xlane.xlu2 %1156 }
 0xbf1   :  { %v1161_v47 = vmul.f32 0.01, %v1157_v46  ;;  %v1213_v49 = vmul.f32 %v1421_v41, %v1206_v44 }
 0xbf2   :  { %v1180_v50 = vsub.f32 1.5, %v1179_v20 }
 0xbf3   :  { %v1457_v51 = vpop.eup %1456  ;;  %v1165_v52 = vadd.f32 1e-05, %v1161_v47  ;;  %v1220_v29 = vadd.f32 %v1422_v45, %v1213_v49 }
 0xbf4   :  { %v1181_v53 = vmul.f32 %v1455_v37, %v1180_v50  ;;  %v1187_v54 = vmul.f32 %v1457_v51, %v1164_v39  ;;  %vm1193_vm0 = vweird.f32 %v1457_v51 }
 0xbf5   :  { %1458 = vrsqrt.f32 %v1165_v52  ;;  %v1224_v55 = vmax.f32 %v1220_v29, 0.0  ;;  %vm1194_vm6 = vmor %vm1192_vm4, %vm1193_vm0  ;;  %vm1202_vm8 = vweird.f32 %v1165_v52 }
 0xbf6   :  { %v1188_v56 = vmul.f32 %v1457_v51, %v1187_v54  ;;  %v1185_v57 = vsel %vm1184_vm3, %v1455_v37, %v1181_v53 }
 0xbf7   :  { %1264 = vmatmul.f32.vlgmr.msrb.gmra.mxu0 %v1224_v55  ;;  %v1207_v38 = vmul.f32 %v1185_v57, %v2043_v59 }
 0xbf8   :  { %v1189_v58 = vmul.f32 0.5, %v1188_v56 }
 0xbf9   :  { %v1214_v60 = vmul.f32 %v1421_v41, %v1207_v38 }
 0xbfa   :  { %v1190_v61 = vsub.f32 1.5, %v1189_v58 }
 0xbfb   :  { %v1459_v27 = vpop.eup %1458  ;;  %v1221_v25 = vadd.f32 %v1422_v45, %v1214_v60 }
 0xbfc   :  { %v1191_v43 = vmul.f32 %v1457_v51, %v1190_v61  ;;  %v1197_v63 = vmul.f32 %v1459_v27, %v1165_v52  ;;  %vm1203_vm7 = vweird.f32 %v1459_v27 }
 0xbfd   :  { %v1225_v0 = vmax.f32 %v1221_v25, 0.0  ;;  %vm1204_vm9 = vmor %vm1202_vm8, %vm1203_vm7 }
 0xbfe   :  { %v1198_v1 = vmul.f32 %v1459_v27, %v1197_v63  ;;  %v1195_v5 = vsel %vm1194_vm6, %v1457_v51, %v1191_v43 }
 0xbff   :  { %1267 = vmatmul.f32.gmra.mxu0 %v1225_v0  ;;  %v1208_v3 = vmul.f32 %v1195_v5, %v2049_v62 }
 0xc00   :  { %v1199_v4 = vmul.f32 0.5, %v1198_v1 }
 0xc01   :  { %v1215_v6 = vmul.f32 %v1421_v41, %v1208_v3 }
 0xc02   :  { %v1200_v59 = vsub.f32 1.5, %v1199_v4 }
 0xc03   :  { %v1222_v7 = vadd.f32 %v1422_v45, %v1215_v6 }
 0xc04   :  { %v1201_v28 = vmul.f32 %v1459_v27, %v1200_v59 }
 0xc05   :  { %v1226_v48 = vmax.f32 %v1222_v7, 0.0 }
 0xc06   :  { %v1205_v8 = vsel %vm1204_vm9, %v1459_v27, %v1201_v28 }
 0xc07   :  { %1270 = vmatmul.f32.gmra.mxu0 %v1226_v48  ;;  %v1209_v11 = vmul.f32 %v1205_v8, %v2055_v2 }
 0xc09   :  { %v1216_v12 = vmul.f32 %v1421_v41, %v1209_v11 }
 0xc0b   :  { %v1223_v13 = vadd.f32 %v1422_v45, %v1216_v12 }
 0xc0d   :  { %v1227_v14 = vmax.f32 %v1223_v13, 0.0 }
 0xc0f   :  { %1273 = vmatmul.f32.gmra.mxu0 %v1227_v14 }
 0xc10   :  { %1559 = shalt.err (!%p1556_p5)
}
 0xc11   :  { %1293 = dma.vmem_to_hbm [thread:$0]  %s1289_s16, 64, %s1291_s18, [#allocation4]   ;;  %v1423_v62 = vld [vmem:[%s1781_s30] ss:$0 sm:$0xff] }
 0xc74   :  { %v1265_v2 = vpop.f32.mrf.mxu0 }
 0xc75   :  { %v1266_v9 = vadd.f32 %v1423_v62, %v1265_v2 }
 0xc77   :  { %1277 = vst.msk [vmem:[%s1786_s12] sm:$0xff] %vm203_vm1, %v1266_v9 }
 0xc7c   :  { %v1268_v10 = vpop.f32.mrf.mxu0 }
 0xc7d   :  { %v1269_v17 = vadd.f32 %v1423_v62, %v1268_v10 }
 0xc7f   :  { %1278 = vst.msk [vmem:[%s1786_s12 + $0x8] sm:$0xff] %vm203_vm1, %v1269_v17 }
 0xc84   :  { %v1271_v18 = vpop.f32.mrf.mxu0 }
 0xc85   :  { %v1272_v19 = vadd.f32 %v1423_v62, %v1271_v18 }
 0xc87   :  { %1279 = vst.msk [vmem:[%s1786_s12 + $0x10] sm:$0xff] %vm203_vm1, %v1272_v19 }
 0xc8c   :  { %v1274_v22 = vpop.f32.mrf.mxu0 }
 0xc8d   :  { %v1275_v23 = vadd.f32 %v1423_v62, %v1274_v22 }
 0xc8f   :  { %1280 = vst.msk [vmem:[%s1786_s12 + $0x18] sm:$0xff] %vm203_vm1, %v1275_v23 }
 0xc90   :  { %1564 = dma.done.wait [#allocation4], 64  }
 0xc91   :  { %1565 = vsyncadd [#allocation4], 4294967232 }
 0xc92   :  { %1300 = vsyncpa [#allocation3], 1 }
 0xc93   :  { %1301 = vsyncpa [#allocation6], 1 }
 0xc94   :  { %1302 = vsyncpa [#allocation4], 1 }

</bundles_post_ra>
